<compile_context>
chip_gen: v5e
topology: v5e:2x2
jax: 0.10.0
libtpu: 0.0.40
codegen_flags: <defaults>
</compile_context>

<pallas_src>
import jax
import jax.numpy as jnp
from jax.experimental import pallas as pl
from jax.experimental.pallas import tpu as pltpu


def lstm_regressor_kernel(x_ref,      # (B_pad, T)      f32, zero-padded batch rows
                          p_ref,      # (8 + 3H, 4H)    f32 packed parameter slab
                          out_ref):   # (B, 1)          f32
    B_pad, T = x_ref.shape
    H4 = p_ref.shape[1]
    H = H4 // 4
    B = out_ref.shape[0]
    R0 = 8  # first sublane row of the matrix blocks in the parameter slab

    # ---- parameter slab views (a single DMA brought all of this into VMEM) --
    w_ih0 = p_ref[0:1, :]                      # (1, 4H)  layer-0 input weights (D_in = 1)
    b0    = p_ref[1:2, :]                      # (1, 4H)  b_ih0 + b_hh0
    b1    = p_ref[2:3, :]                      # (1, 4H)  b_ih1 + b_hh1
    fcrow = p_ref[3:4, :]                      # (1, 4H)  lanes [0:H] = w_fc, lane H = b_fc
    w_hh0 = p_ref[R0:R0 + H, :]                # (H, 4H)
    w_ih1 = p_ref[R0 + H:R0 + 2 * H, :]        # (H, 4H)
    w_hh1 = p_ref[R0 + 2 * H:R0 + 3 * H, :]    # (H, 4H)

    # ---- broadcasts hoisted out of the unrolled loop (JAX does not CSE them)
    w_ih0_b = jnp.broadcast_to(w_ih0, (B_pad, H4))
    b0_b = jnp.broadcast_to(b0, (B_pad, H4))
    b1_b = jnp.broadcast_to(b1, (B_pad, H4))

    def cell(gates, c_prev):
        # Full-vreg sigmoid + tanh (2 EUP pushes total), then extract the
        # i/f/g/o blocks in PyTorch's native gate order.
        sg = jax.nn.sigmoid(gates)
        tg = jnp.tanh(gates)
        i = sg[:, 0 * H:1 * H]
        f = sg[:, 1 * H:2 * H]
        g = tg[:, 2 * H:3 * H]
        o = sg[:, 3 * H:4 * H]
        c_new = f * c_prev + i * g
        h_new = o * jnp.tanh(c_new)
        return h_new, c_new

    zeros = jnp.zeros((B_pad, H), jnp.float32)
    h0, c0, h1, c1 = zeros, zeros, zeros, zeros

    # Fully unrolled time loop (T is small & static), h/c carried as values so
    # the scheduler can overlap layer 0 of step t+1 with layer 1 of step t.
    # TODO(synk): for large T switch to lax.fori_loop(..., unroll=4) to bound
    # vreg live ranges (full unroll is only appropriate for T <= ~8).
    for t in range(T):
        # layer 0: D_in == 1 -> input projection is a VPU outer product
        # (no padded K=1 MXU matmul, no wrapper-side transpose of x).
        g0 = (x_ref[:, t:t + 1] * w_ih0_b + b0_b
              + jnp.dot(h0, w_hh0, preferred_element_type=jnp.float32))
        h0, c0 = cell(g0, c0)

        # TODO(synk): inter-layer dropout (p=0.2) is training-only; identity here.

        # layer 1: split dots — the h1 term does not depend on this step's h0,
        # so it sits off the serial critical chain (no lane concat needed).
        g1 = (jnp.dot(h0, w_ih1, preferred_element_type=jnp.float32)
              + jnp.dot(h1, w_hh1, preferred_element_type=jnp.float32)
              + b1_b)
        h1, c1 = cell(g1, c1)

    # ---- final fc (H -> 1): VPU multiply + lane reduction (no N=1 matmul) ---
    y = (jnp.sum(h1 * fcrow[:, :H], axis=-1, keepdims=True)
         + fcrow[:, H:H + 1])
    out_ref[...] = y[:B, :]


def pack_lstm_params(p):
    """Pack all weights/biases into one (8 + 3H, 4H) f32 slab (done once).

    Row layout (every matrix block starts on an 8-sublane boundary):
      row 0        : w_ih0^T          (1, 4H)   (input_dim = 1)
      row 1        : b_ih0 + b_hh0    (1, 4H)
      row 2        : b_ih1 + b_hh1    (1, 4H)
      row 3        : [w_fc | b_fc | 0](1, 4H)
      rows 4..7    : zero padding
      rows 8..8+H      : w_hh0^T      (H, 4H)
      rows 8+H..8+2H   : w_ih1^T      (H, 4H)
      rows 8+2H..8+3H  : w_hh1^T      (H, 4H)
    """
    H = p["w_hh0"].shape[1]
    H4 = 4 * H
    f32 = jnp.float32

    w_ih0_row = p["w_ih0"].astype(f32).T.reshape(1, H4)          # (4H,1) -> (1,4H)
    b0 = (p["b_ih0"] + p["b_hh0"]).astype(f32).reshape(1, H4)
    b1 = (p["b_ih1"] + p["b_hh1"]).astype(f32).reshape(1, H4)
    fcrow = jnp.zeros((1, H4), f32)
    fcrow = fcrow.at[0, :H].set(p["w_fc"].astype(f32).reshape(H))
    fcrow = fcrow.at[0, H].set(p["b_fc"].astype(f32).reshape(()))
    pad = jnp.zeros((4, H4), f32)
    w_hh0 = p["w_hh0"].astype(f32).T                             # (H, 4H)
    w_ih1 = p["w_ih1"].astype(f32).T                             # (H, 4H)
    w_hh1 = p["w_hh1"].astype(f32).T                             # (H, 4H)
    return jnp.concatenate([w_ih0_row, b0, b1, fcrow, pad,
                            w_hh0, w_ih1, w_hh1], axis=0)        # (8+3H, 4H)


def lstm_regressor_forward(x, params_slab):
    """x: (B, T, 1) float32 -> (B, 1) float32."""
    B, T, D = x.shape
    assert D == 1, "LSTMRegressor uses input_dim=1"
    B_pad = max(8, ((B + 7) // 8) * 8)   # pad batch to a full f32 sublane tile
    x_pad = jnp.zeros((B_pad, T), jnp.float32).at[:B, :].set(
        x[..., 0].astype(jnp.float32))

    vmem = pl.BlockSpec(memory_space=pltpu.MemorySpace.VMEM)
    # Gridless single-program kernel: the whole problem fits in VMEM and the
    # recurrence is inherently serial.  (TODO(synk): on v7x, a batch grid with
    # dimension_semantics=("parallel",) would use the second TensorCore once
    # the batch exceeds one sublane tile.)
    return pl.pallas_call(
        lstm_regressor_kernel,
        out_shape=jax.ShapeDtypeStruct((B, 1), jnp.float32),
        in_specs=[vmem, vmem],
        out_specs=vmem,
    )(x_pad, params_slab)


def lstm_regressor_reference(x, p):
    """Pure-JAX reference matching torch.nn.LSTM + Linear (eval mode)."""
    B, T, D = x.shape
    H = p["w_hh0"].shape[1]

    def cell(x_t, h, c, wih, whh, b):
        g = x_t @ wih.T + h @ whh.T + b
        i = jax.nn.sigmoid(g[:, 0 * H:1 * H])
        f = jax.nn.sigmoid(g[:, 1 * H:2 * H])
        gg = jnp.tanh(g[:, 2 * H:3 * H])
        o = jax.nn.sigmoid(g[:, 3 * H:4 * H])
        c = f * c + i * gg
        h = o * jnp.tanh(c)
        return h, c

    h0 = c0 = h1 = c1 = jnp.zeros((B, H), jnp.float32)
    b0 = p["b_ih0"] + p["b_hh0"]
    b1 = p["b_ih1"] + p["b_hh1"]
    for t in range(T):
        h0, c0 = cell(x[:, t, :], h0, c0, p["w_ih0"], p["w_hh0"], b0)
        h1, c1 = cell(h0, h1, c1, p["w_ih1"], p["w_hh1"], b1)
    return h1 @ p["w_fc"].T + p["b_fc"]


if __name__ == "__main__":
    # Small shapes consistent with the module: input_dim=1, hidden_dim=32,
    # num_layers=2, batch=2, seq=8.
    B, T, D, H = 2, 8, 1, 32

    key = jax.random.PRNGKey(0)
    keys = jax.random.split(key, 12)
    bound = 1.0 / jnp.sqrt(jnp.float32(H))

    def u(k, shape):
        return jax.random.uniform(k, shape, jnp.float32, -bound, bound)

    params = {
        "w_ih0": u(keys[0], (4 * H, D)),
        "w_hh0": u(keys[1], (4 * H, H)),
        "b_ih0": u(keys[2], (4 * H,)),
        "b_hh0": u(keys[3], (4 * H,)),
        "w_ih1": u(keys[4], (4 * H, H)),
        "w_hh1": u(keys[5], (4 * H, H)),
        "b_ih1": u(keys[6], (4 * H,)),
        "b_hh1": u(keys[7], (4 * H,)),
        "w_fc":  u(keys[8], (1, H)),
        "b_fc":  u(keys[9], (1,)),
    }

    x = jax.random.normal(keys[10], (B, T, D), jnp.float32)

    slab = pack_lstm_params(params)          # done once; weights are static
    out = lstm_regressor_forward(x, slab)
    out = jax.block_until_ready(out)

    ref = lstm_regressor_reference(x, params)
    assert out.shape == (B, 1), out.shape
    assert jnp.allclose(out, ref, atol=1e-5, rtol=1e-5), (out, ref)

    print("KERNEL_OK")
</pallas_src>

<mosaic_0001>
module attributes {stable_mosaic.version = 11 : i64} {
  func.func @lstm_regressor_kernel(%arg0: memref<8x8xf32, #tpu.memory_space<vmem>>, %arg1: memref<104x128xf32, #tpu.memory_space<vmem>>, %arg2: memref<2x1xf32, #tpu.memory_space<vmem>>) attributes {dimension_semantics = [], scalar_prefetch = 0 : i64, scratch_operands = 0 : i64, tpu.core_type = #tpu.core_type<tc>} {
    %c0 = arith.constant 0 : index
    %c0_0 = arith.constant 0 : index
    %0 = vector.load %arg1[%c0, %c0_0] : memref<104x128xf32, #tpu.memory_space<vmem>>, vector<1x128xf32>
    %c1 = arith.constant 1 : index
    %c0_1 = arith.constant 0 : index
    %1 = vector.load %arg1[%c1, %c0_1] : memref<104x128xf32, #tpu.memory_space<vmem>>, vector<1x128xf32>
    %c2 = arith.constant 2 : index
    %c0_2 = arith.constant 0 : index
    %2 = vector.load %arg1[%c2, %c0_2] : memref<104x128xf32, #tpu.memory_space<vmem>>, vector<1x128xf32>
    %c3 = arith.constant 3 : index
    %c0_3 = arith.constant 0 : index
    %3 = vector.load %arg1[%c3, %c0_3] : memref<104x128xf32, #tpu.memory_space<vmem>>, vector<1x128xf32>
    %c8 = arith.constant 8 : index
    %c0_4 = arith.constant 0 : index
    %4 = vector.load %arg1[%c8, %c0_4] : memref<104x128xf32, #tpu.memory_space<vmem>>, vector<32x128xf32>
    %c40 = arith.constant 40 : index
    %c0_5 = arith.constant 0 : index
    %5 = vector.load %arg1[%c40, %c0_5] : memref<104x128xf32, #tpu.memory_space<vmem>>, vector<32x128xf32>
    %c72 = arith.constant 72 : index
    %c0_6 = arith.constant 0 : index
    %6 = vector.load %arg1[%c72, %c0_6] : memref<104x128xf32, #tpu.memory_space<vmem>>, vector<32x128xf32>
    %7 = vector.shape_cast %0 : vector<1x128xf32> to vector<1x128xf32>
    %8 = vector.broadcast %7 : vector<1x128xf32> to vector<8x128xf32>
    %9 = vector.shape_cast %1 : vector<1x128xf32> to vector<1x128xf32>
    %10 = vector.broadcast %9 : vector<1x128xf32> to vector<8x128xf32>
    %11 = vector.shape_cast %2 : vector<1x128xf32> to vector<1x128xf32>
    %12 = vector.broadcast %11 : vector<1x128xf32> to vector<8x128xf32>
    %cst = arith.constant 0.000000e+00 : f32
    %13 = vector.broadcast %cst : f32 to vector<8x32xf32>
    %c0_7 = arith.constant 0 : index
    %c0_8 = arith.constant 0 : index
    %14 = vector.load %arg0[%c0_7, %c0_8] : memref<8x8xf32, #tpu.memory_space<vmem>>, vector<8x1xf32>
    %15 = vector.broadcast %14 : vector<8x1xf32> to vector<8x128xf32>
    %16 = arith.mulf %15, %8 : vector<8x128xf32>
    %17 = arith.addf %16, %10 : vector<8x128xf32>
    %cst_9 = arith.constant dense<0.000000e+00> : vector<8x128xf32>
    %18 = tpu.matmul %13, %4, %cst_9 {dimension_numbers = #tpu.dot_dimension_numbers<[1], [0], [0], [1], [0, 0, 1, 1], [], []>} : vector<8x32xf32>, vector<32x128xf32>, vector<8x128xf32> -> vector<8x128xf32>
    %19 = arith.addf %17, %18 : vector<8x128xf32>
    %20 = arith.negf %19 : vector<8x128xf32>
    %21 = math.exp %20 : vector<8x128xf32>
    %cst_10 = arith.constant 1.000000e+00 : f32
    %22 = vector.broadcast %cst_10 : f32 to vector<8x128xf32>
    %23 = arith.addf %22, %21 : vector<8x128xf32>
    %24 = arith.divf %22, %23 : vector<8x128xf32>
    %25 = math.tanh %19 : vector<8x128xf32>
    %26 = vector.extract_strided_slice %24 {offsets = [0, 0], sizes = [8, 32], strides = [1, 1]} : vector<8x128xf32> to vector<8x32xf32>
    %27 = vector.extract_strided_slice %24 {offsets = [0, 32], sizes = [8, 32], strides = [1, 1]} : vector<8x128xf32> to vector<8x32xf32>
    %28 = vector.extract_strided_slice %25 {offsets = [0, 64], sizes = [8, 32], strides = [1, 1]} : vector<8x128xf32> to vector<8x32xf32>
    %29 = vector.extract_strided_slice %24 {offsets = [0, 96], sizes = [8, 32], strides = [1, 1]} : vector<8x128xf32> to vector<8x32xf32>
    %30 = arith.mulf %27, %13 : vector<8x32xf32>
    %31 = arith.mulf %26, %28 : vector<8x32xf32>
    %32 = arith.addf %30, %31 : vector<8x32xf32>
    %33 = math.tanh %32 : vector<8x32xf32>
    %34 = arith.mulf %29, %33 : vector<8x32xf32>
    %cst_11 = arith.constant dense<0.000000e+00> : vector<8x128xf32>
    %35 = tpu.matmul %34, %5, %cst_11 {dimension_numbers = #tpu.dot_dimension_numbers<[1], [0], [0], [1], [0, 0, 1, 1], [], []>} : vector<8x32xf32>, vector<32x128xf32>, vector<8x128xf32> -> vector<8x128xf32>
    %cst_12 = arith.constant dense<0.000000e+00> : vector<8x128xf32>
    %36 = tpu.matmul %13, %6, %cst_12 {dimension_numbers = #tpu.dot_dimension_numbers<[1], [0], [0], [1], [0, 0, 1, 1], [], []>} : vector<8x32xf32>, vector<32x128xf32>, vector<8x128xf32> -> vector<8x128xf32>
    %37 = arith.addf %35, %36 : vector<8x128xf32>
    %38 = arith.addf %37, %12 : vector<8x128xf32>
    %39 = arith.negf %38 : vector<8x128xf32>
    %40 = math.exp %39 : vector<8x128xf32>
    %cst_13 = arith.constant 1.000000e+00 : f32
    %41 = vector.broadcast %cst_13 : f32 to vector<8x128xf32>
    %42 = arith.addf %41, %40 : vector<8x128xf32>
    %43 = arith.divf %41, %42 : vector<8x128xf32>
    %44 = math.tanh %38 : vector<8x128xf32>
    %45 = vector.extract_strided_slice %43 {offsets = [0, 0], sizes = [8, 32], strides = [1, 1]} : vector<8x128xf32> to vector<8x32xf32>
    %46 = vector.extract_strided_slice %43 {offsets = [0, 32], sizes = [8, 32], strides = [1, 1]} : vector<8x128xf32> to vector<8x32xf32>
    %47 = vector.extract_strided_slice %44 {offsets = [0, 64], sizes = [8, 32], strides = [1, 1]} : vector<8x128xf32> to vector<8x32xf32>
    %48 = vector.extract_strided_slice %43 {offsets = [0, 96], sizes = [8, 32], strides = [1, 1]} : vector<8x128xf32> to vector<8x32xf32>
    %49 = arith.mulf %46, %13 : vector<8x32xf32>
    %50 = arith.mulf %45, %47 : vector<8x32xf32>
    %51 = arith.addf %49, %50 : vector<8x32xf32>
    %52 = math.tanh %51 : vector<8x32xf32>
    %53 = arith.mulf %48, %52 : vector<8x32xf32>
    %c0_14 = arith.constant 0 : index
    %c1_15 = arith.constant 1 : index
    %54 = vector.load %arg0[%c0_14, %c1_15] : memref<8x8xf32, #tpu.memory_space<vmem>>, vector<8x1xf32>
    %55 = vector.broadcast %54 : vector<8x1xf32> to vector<8x128xf32>
    %56 = arith.mulf %55, %8 : vector<8x128xf32>
    %57 = arith.addf %56, %10 : vector<8x128xf32>
    %cst_16 = arith.constant dense<0.000000e+00> : vector<8x128xf32>
    %58 = tpu.matmul %34, %4, %cst_16 {dimension_numbers = #tpu.dot_dimension_numbers<[1], [0], [0], [1], [0, 0, 1, 1], [], []>} : vector<8x32xf32>, vector<32x128xf32>, vector<8x128xf32> -> vector<8x128xf32>
    %59 = arith.addf %57, %58 : vector<8x128xf32>
    %60 = arith.negf %59 : vector<8x128xf32>
    %61 = math.exp %60 : vector<8x128xf32>
    %cst_17 = arith.constant 1.000000e+00 : f32
    %62 = vector.broadcast %cst_17 : f32 to vector<8x128xf32>
    %63 = arith.addf %62, %61 : vector<8x128xf32>
    %64 = arith.divf %62, %63 : vector<8x128xf32>
    %65 = math.tanh %59 : vector<8x128xf32>
    %66 = vector.extract_strided_slice %64 {offsets = [0, 0], sizes = [8, 32], strides = [1, 1]} : vector<8x128xf32> to vector<8x32xf32>
    %67 = vector.extract_strided_slice %64 {offsets = [0, 32], sizes = [8, 32], strides = [1, 1]} : vector<8x128xf32> to vector<8x32xf32>
    %68 = vector.extract_strided_slice %65 {offsets = [0, 64], sizes = [8, 32], strides = [1, 1]} : vector<8x128xf32> to vector<8x32xf32>
    %69 = vector.extract_strided_slice %64 {offsets = [0, 96], sizes = [8, 32], strides = [1, 1]} : vector<8x128xf32> to vector<8x32xf32>
    %70 = arith.mulf %67, %32 : vector<8x32xf32>
    %71 = arith.mulf %66, %68 : vector<8x32xf32>
    %72 = arith.addf %70, %71 : vector<8x32xf32>
    %73 = math.tanh %72 : vector<8x32xf32>
    %74 = arith.mulf %69, %73 : vector<8x32xf32>
    %cst_18 = arith.constant dense<0.000000e+00> : vector<8x128xf32>
    %75 = tpu.matmul %74, %5, %cst_18 {dimension_numbers = #tpu.dot_dimension_numbers<[1], [0], [0], [1], [0, 0, 1, 1], [], []>} : vector<8x32xf32>, vector<32x128xf32>, vector<8x128xf32> -> vector<8x128xf32>
    %cst_19 = arith.constant dense<0.000000e+00> : vector<8x128xf32>
    %76 = tpu.matmul %53, %6, %cst_19 {dimension_numbers = #tpu.dot_dimension_numbers<[1], [0], [0], [1], [0, 0, 1, 1], [], []>} : vector<8x32xf32>, vector<32x128xf32>, vector<8x128xf32> -> vector<8x128xf32>
    %77 = arith.addf %75, %76 : vector<8x128xf32>
    %78 = arith.addf %77, %12 : vector<8x128xf32>
    %79 = arith.negf %78 : vector<8x128xf32>
    %80 = math.exp %79 : vector<8x128xf32>
    %cst_20 = arith.constant 1.000000e+00 : f32
    %81 = vector.broadcast %cst_20 : f32 to vector<8x128xf32>
    %82 = arith.addf %81, %80 : vector<8x128xf32>
    %83 = arith.divf %81, %82 : vector<8x128xf32>
    %84 = math.tanh %78 : vector<8x128xf32>
    %85 = vector.extract_strided_slice %83 {offsets = [0, 0], sizes = [8, 32], strides = [1, 1]} : vector<8x128xf32> to vector<8x32xf32>
    %86 = vector.extract_strided_slice %83 {offsets = [0, 32], sizes = [8, 32], strides = [1, 1]} : vector<8x128xf32> to vector<8x32xf32>
    %87 = vector.extract_strided_slice %84 {offsets = [0, 64], sizes = [8, 32], strides = [1, 1]} : vector<8x128xf32> to vector<8x32xf32>
    %88 = vector.extract_strided_slice %83 {offsets = [0, 96], sizes = [8, 32], strides = [1, 1]} : vector<8x128xf32> to vector<8x32xf32>
    %89 = arith.mulf %86, %51 : vector<8x32xf32>
    %90 = arith.mulf %85, %87 : vector<8x32xf32>
    %91 = arith.addf %89, %90 : vector<8x32xf32>
    %92 = math.tanh %91 : vector<8x32xf32>
    %93 = arith.mulf %88, %92 : vector<8x32xf32>
    %c0_21 = arith.constant 0 : index
    %c2_22 = arith.constant 2 : index
    %94 = vector.load %arg0[%c0_21, %c2_22] : memref<8x8xf32, #tpu.memory_space<vmem>>, vector<8x1xf32>
    %95 = vector.broadcast %94 : vector<8x1xf32> to vector<8x128xf32>
    %96 = arith.mulf %95, %8 : vector<8x128xf32>
    %97 = arith.addf %96, %10 : vector<8x128xf32>
    %cst_23 = arith.constant dense<0.000000e+00> : vector<8x128xf32>
    %98 = tpu.matmul %74, %4, %cst_23 {dimension_numbers = #tpu.dot_dimension_numbers<[1], [0], [0], [1], [0, 0, 1, 1], [], []>} : vector<8x32xf32>, vector<32x128xf32>, vector<8x128xf32> -> vector<8x128xf32>
    %99 = arith.addf %97, %98 : vector<8x128xf32>
    %100 = arith.negf %99 : vector<8x128xf32>
    %101 = math.exp %100 : vector<8x128xf32>
    %cst_24 = arith.constant 1.000000e+00 : f32
    %102 = vector.broadcast %cst_24 : f32 to vector<8x128xf32>
    %103 = arith.addf %102, %101 : vector<8x128xf32>
    %104 = arith.divf %102, %103 : vector<8x128xf32>
    %105 = math.tanh %99 : vector<8x128xf32>
    %106 = vector.extract_strided_slice %104 {offsets = [0, 0], sizes = [8, 32], strides = [1, 1]} : vector<8x128xf32> to vector<8x32xf32>
    %107 = vector.extract_strided_slice %104 {offsets = [0, 32], sizes = [8, 32], strides = [1, 1]} : vector<8x128xf32> to vector<8x32xf32>
    %108 = vector.extract_strided_slice %105 {offsets = [0, 64], sizes = [8, 32], strides = [1, 1]} : vector<8x128xf32> to vector<8x32xf32>
    %109 = vector.extract_strided_slice %104 {offsets = [0, 96], sizes = [8, 32], strides = [1, 1]} : vector<8x128xf32> to vector<8x32xf32>
    %110 = arith.mulf %107, %72 : vector<8x32xf32>
    %111 = arith.mulf %106, %108 : vector<8x32xf32>
    %112 = arith.addf %110, %111 : vector<8x32xf32>
    %113 = math.tanh %112 : vector<8x32xf32>
    %114 = arith.mulf %109, %113 : vector<8x32xf32>
    %cst_25 = arith.constant dense<0.000000e+00> : vector<8x128xf32>
    %115 = tpu.matmul %114, %5, %cst_25 {dimension_numbers = #tpu.dot_dimension_numbers<[1], [0], [0], [1], [0, 0, 1, 1], [], []>} : vector<8x32xf32>, vector<32x128xf32>, vector<8x128xf32> -> vector<8x128xf32>
    %cst_26 = arith.constant dense<0.000000e+00> : vector<8x128xf32>
    %116 = tpu.matmul %93, %6, %cst_26 {dimension_numbers = #tpu.dot_dimension_numbers<[1], [0], [0], [1], [0, 0, 1, 1], [], []>} : vector<8x32xf32>, vector<32x128xf32>, vector<8x128xf32> -> vector<8x128xf32>
    %117 = arith.addf %115, %116 : vector<8x128xf32>
    %118 = arith.addf %117, %12 : vector<8x128xf32>
    %119 = arith.negf %118 : vector<8x128xf32>
    %120 = math.exp %119 : vector<8x128xf32>
    %cst_27 = arith.constant 1.000000e+00 : f32
    %121 = vector.broadcast %cst_27 : f32 to vector<8x128xf32>
    %122 = arith.addf %121, %120 : vector<8x128xf32>
    %123 = arith.divf %121, %122 : vector<8x128xf32>
    %124 = math.tanh %118 : vector<8x128xf32>
    %125 = vector.extract_strided_slice %123 {offsets = [0, 0], sizes = [8, 32], strides = [1, 1]} : vector<8x128xf32> to vector<8x32xf32>
    %126 = vector.extract_strided_slice %123 {offsets = [0, 32], sizes = [8, 32], strides = [1, 1]} : vector<8x128xf32> to vector<8x32xf32>
    %127 = vector.extract_strided_slice %124 {offsets = [0, 64], sizes = [8, 32], strides = [1, 1]} : vector<8x128xf32> to vector<8x32xf32>
    %128 = vector.extract_strided_slice %123 {offsets = [0, 96], sizes = [8, 32], strides = [1, 1]} : vector<8x128xf32> to vector<8x32xf32>
    %129 = arith.mulf %126, %91 : vector<8x32xf32>
    %130 = arith.mulf %125, %127 : vector<8x32xf32>
    %131 = arith.addf %129, %130 : vector<8x32xf32>
    %132 = math.tanh %131 : vector<8x32xf32>
    %133 = arith.mulf %128, %132 : vector<8x32xf32>
    %c0_28 = arith.constant 0 : index
    %c3_29 = arith.constant 3 : index
    %134 = vector.load %arg0[%c0_28, %c3_29] : memref<8x8xf32, #tpu.memory_space<vmem>>, vector<8x1xf32>
    %135 = vector.broadcast %134 : vector<8x1xf32> to vector<8x128xf32>
    %136 = arith.mulf %135, %8 : vector<8x128xf32>
    %137 = arith.addf %136, %10 : vector<8x128xf32>
    %cst_30 = arith.constant dense<0.000000e+00> : vector<8x128xf32>
    %138 = tpu.matmul %114, %4, %cst_30 {dimension_numbers = #tpu.dot_dimension_numbers<[1], [0], [0], [1], [0, 0, 1, 1], [], []>} : vector<8x32xf32>, vector<32x128xf32>, vector<8x128xf32> -> vector<8x128xf32>
    %139 = arith.addf %137, %138 : vector<8x128xf32>
    %140 = arith.negf %139 : vector<8x128xf32>
    %141 = math.exp %140 : vector<8x128xf32>
    %cst_31 = arith.constant 1.000000e+00 : f32
    %142 = vector.broadcast %cst_31 : f32 to vector<8x128xf32>
    %143 = arith.addf %142, %141 : vector<8x128xf32>
    %144 = arith.divf %142, %143 : vector<8x128xf32>
    %145 = math.tanh %139 : vector<8x128xf32>
    %146 = vector.extract_strided_slice %144 {offsets = [0, 0], sizes = [8, 32], strides = [1, 1]} : vector<8x128xf32> to vector<8x32xf32>
    %147 = vector.extract_strided_slice %144 {offsets = [0, 32], sizes = [8, 32], strides = [1, 1]} : vector<8x128xf32> to vector<8x32xf32>
    %148 = vector.extract_strided_slice %145 {offsets = [0, 64], sizes = [8, 32], strides = [1, 1]} : vector<8x128xf32> to vector<8x32xf32>
    %149 = vector.extract_strided_slice %144 {offsets = [0, 96], sizes = [8, 32], strides = [1, 1]} : vector<8x128xf32> to vector<8x32xf32>
    %150 = arith.mulf %147, %112 : vector<8x32xf32>
    %151 = arith.mulf %146, %148 : vector<8x32xf32>
    %152 = arith.addf %150, %151 : vector<8x32xf32>
    %153 = math.tanh %152 : vector<8x32xf32>
    %154 = arith.mulf %149, %153 : vector<8x32xf32>
    %cst_32 = arith.constant dense<0.000000e+00> : vector<8x128xf32>
    %155 = tpu.matmul %154, %5, %cst_32 {dimension_numbers = #tpu.dot_dimension_numbers<[1], [0], [0], [1], [0, 0, 1, 1], [], []>} : vector<8x32xf32>, vector<32x128xf32>, vector<8x128xf32> -> vector<8x128xf32>
    %cst_33 = arith.constant dense<0.000000e+00> : vector<8x128xf32>
    %156 = tpu.matmul %133, %6, %cst_33 {dimension_numbers = #tpu.dot_dimension_numbers<[1], [0], [0], [1], [0, 0, 1, 1], [], []>} : vector<8x32xf32>, vector<32x128xf32>, vector<8x128xf32> -> vector<8x128xf32>
    %157 = arith.addf %155, %156 : vector<8x128xf32>
    %158 = arith.addf %157, %12 : vector<8x128xf32>
    %159 = arith.negf %158 : vector<8x128xf32>
    %160 = math.exp %159 : vector<8x128xf32>
    %cst_34 = arith.constant 1.000000e+00 : f32
    %161 = vector.broadcast %cst_34 : f32 to vector<8x128xf32>
    %162 = arith.addf %161, %160 : vector<8x128xf32>
    %163 = arith.divf %161, %162 : vector<8x128xf32>
    %164 = math.tanh %158 : vector<8x128xf32>
    %165 = vector.extract_strided_slice %163 {offsets = [0, 0], sizes = [8, 32], strides = [1, 1]} : vector<8x128xf32> to vector<8x32xf32>
    %166 = vector.extract_strided_slice %163 {offsets = [0, 32], sizes = [8, 32], strides = [1, 1]} : vector<8x128xf32> to vector<8x32xf32>
    %167 = vector.extract_strided_slice %164 {offsets = [0, 64], sizes = [8, 32], strides = [1, 1]} : vector<8x128xf32> to vector<8x32xf32>
    %168 = vector.extract_strided_slice %163 {offsets = [0, 96], sizes = [8, 32], strides = [1, 1]} : vector<8x128xf32> to vector<8x32xf32>
    %169 = arith.mulf %166, %131 : vector<8x32xf32>
    %170 = arith.mulf %165, %167 : vector<8x32xf32>
    %171 = arith.addf %169, %170 : vector<8x32xf32>
    %172 = math.tanh %171 : vector<8x32xf32>
    %173 = arith.mulf %168, %172 : vector<8x32xf32>
    %c0_35 = arith.constant 0 : index
    %c4 = arith.constant 4 : index
    %174 = vector.load %arg0[%c0_35, %c4] : memref<8x8xf32, #tpu.memory_space<vmem>>, vector<8x1xf32>
    %175 = vector.broadcast %174 : vector<8x1xf32> to vector<8x128xf32>
    %176 = arith.mulf %175, %8 : vector<8x128xf32>
    %177 = arith.addf %176, %10 : vector<8x128xf32>
    %cst_36 = arith.constant dense<0.000000e+00> : vector<8x128xf32>
    %178 = tpu.matmul %154, %4, %cst_36 {dimension_numbers = #tpu.dot_dimension_numbers<[1], [0], [0], [1], [0, 0, 1, 1], [], []>} : vector<8x32xf32>, vector<32x128xf32>, vector<8x128xf32> -> vector<8x128xf32>
    %179 = arith.addf %177, %178 : vector<8x128xf32>
    %180 = arith.negf %179 : vector<8x128xf32>
    %181 = math.exp %180 : vector<8x128xf32>
    %cst_37 = arith.constant 1.000000e+00 : f32
    %182 = vector.broadcast %cst_37 : f32 to vector<8x128xf32>
    %183 = arith.addf %182, %181 : vector<8x128xf32>
    %184 = arith.divf %182, %183 : vector<8x128xf32>
    %185 = math.tanh %179 : vector<8x128xf32>
    %186 = vector.extract_strided_slice %184 {offsets = [0, 0], sizes = [8, 32], strides = [1, 1]} : vector<8x128xf32> to vector<8x32xf32>
    %187 = vector.extract_strided_slice %184 {offsets = [0, 32], sizes = [8, 32], strides = [1, 1]} : vector<8x128xf32> to vector<8x32xf32>
    %188 = vector.extract_strided_slice %185 {offsets = [0, 64], sizes = [8, 32], strides = [1, 1]} : vector<8x128xf32> to vector<8x32xf32>
    %189 = vector.extract_strided_slice %184 {offsets = [0, 96], sizes = [8, 32], strides = [1, 1]} : vector<8x128xf32> to vector<8x32xf32>
    %190 = arith.mulf %187, %152 : vector<8x32xf32>
    %191 = arith.mulf %186, %188 : vector<8x32xf32>
    %192 = arith.addf %190, %191 : vector<8x32xf32>
    %193 = math.tanh %192 : vector<8x32xf32>
    %194 = arith.mulf %189, %193 : vector<8x32xf32>
    %cst_38 = arith.constant dense<0.000000e+00> : vector<8x128xf32>
    %195 = tpu.matmul %194, %5, %cst_38 {dimension_numbers = #tpu.dot_dimension_numbers<[1], [0], [0], [1], [0, 0, 1, 1], [], []>} : vector<8x32xf32>, vector<32x128xf32>, vector<8x128xf32> -> vector<8x128xf32>
    %cst_39 = arith.constant dense<0.000000e+00> : vector<8x128xf32>
    %196 = tpu.matmul %173, %6, %cst_39 {dimension_numbers = #tpu.dot_dimension_numbers<[1], [0], [0], [1], [0, 0, 1, 1], [], []>} : vector<8x32xf32>, vector<32x128xf32>, vector<8x128xf32> -> vector<8x128xf32>
    %197 = arith.addf %195, %196 : vector<8x128xf32>
    %198 = arith.addf %197, %12 : vector<8x128xf32>
    %199 = arith.negf %198 : vector<8x128xf32>
    %200 = math.exp %199 : vector<8x128xf32>
    %cst_40 = arith.constant 1.000000e+00 : f32
    %201 = vector.broadcast %cst_40 : f32 to vector<8x128xf32>
    %202 = arith.addf %201, %200 : vector<8x128xf32>
    %203 = arith.divf %201, %202 : vector<8x128xf32>
    %204 = math.tanh %198 : vector<8x128xf32>
    %205 = vector.extract_strided_slice %203 {offsets = [0, 0], sizes = [8, 32], strides = [1, 1]} : vector<8x128xf32> to vector<8x32xf32>
    %206 = vector.extract_strided_slice %203 {offsets = [0, 32], sizes = [8, 32], strides = [1, 1]} : vector<8x128xf32> to vector<8x32xf32>
    %207 = vector.extract_strided_slice %204 {offsets = [0, 64], sizes = [8, 32], strides = [1, 1]} : vector<8x128xf32> to vector<8x32xf32>
    %208 = vector.extract_strided_slice %203 {offsets = [0, 96], sizes = [8, 32], strides = [1, 1]} : vector<8x128xf32> to vector<8x32xf32>
    %209 = arith.mulf %206, %171 : vector<8x32xf32>
    %210 = arith.mulf %205, %207 : vector<8x32xf32>
    %211 = arith.addf %209, %210 : vector<8x32xf32>
    %212 = math.tanh %211 : vector<8x32xf32>
    %213 = arith.mulf %208, %212 : vector<8x32xf32>
    %c0_41 = arith.constant 0 : index
    %c5 = arith.constant 5 : index
    %214 = vector.load %arg0[%c0_41, %c5] : memref<8x8xf32, #tpu.memory_space<vmem>>, vector<8x1xf32>
    %215 = vector.broadcast %214 : vector<8x1xf32> to vector<8x128xf32>
    %216 = arith.mulf %215, %8 : vector<8x128xf32>
    %217 = arith.addf %216, %10 : vector<8x128xf32>
    %cst_42 = arith.constant dense<0.000000e+00> : vector<8x128xf32>
    %218 = tpu.matmul %194, %4, %cst_42 {dimension_numbers = #tpu.dot_dimension_numbers<[1], [0], [0], [1], [0, 0, 1, 1], [], []>} : vector<8x32xf32>, vector<32x128xf32>, vector<8x128xf32> -> vector<8x128xf32>
    %219 = arith.addf %217, %218 : vector<8x128xf32>
    %220 = arith.negf %219 : vector<8x128xf32>
    %221 = math.exp %220 : vector<8x128xf32>
    %cst_43 = arith.constant 1.000000e+00 : f32
    %222 = vector.broadcast %cst_43 : f32 to vector<8x128xf32>
    %223 = arith.addf %222, %221 : vector<8x128xf32>
    %224 = arith.divf %222, %223 : vector<8x128xf32>
    %225 = math.tanh %219 : vector<8x128xf32>
    %226 = vector.extract_strided_slice %224 {offsets = [0, 0], sizes = [8, 32], strides = [1, 1]} : vector<8x128xf32> to vector<8x32xf32>
    %227 = vector.extract_strided_slice %224 {offsets = [0, 32], sizes = [8, 32], strides = [1, 1]} : vector<8x128xf32> to vector<8x32xf32>
    %228 = vector.extract_strided_slice %225 {offsets = [0, 64], sizes = [8, 32], strides = [1, 1]} : vector<8x128xf32> to vector<8x32xf32>
    %229 = vector.extract_strided_slice %224 {offsets = [0, 96], sizes = [8, 32], strides = [1, 1]} : vector<8x128xf32> to vector<8x32xf32>
    %230 = arith.mulf %227, %192 : vector<8x32xf32>
    %231 = arith.mulf %226, %228 : vector<8x32xf32>
    %232 = arith.addf %230, %231 : vector<8x32xf32>
    %233 = math.tanh %232 : vector<8x32xf32>
    %234 = arith.mulf %229, %233 : vector<8x32xf32>
    %cst_44 = arith.constant dense<0.000000e+00> : vector<8x128xf32>
    %235 = tpu.matmul %234, %5, %cst_44 {dimension_numbers = #tpu.dot_dimension_numbers<[1], [0], [0], [1], [0, 0, 1, 1], [], []>} : vector<8x32xf32>, vector<32x128xf32>, vector<8x128xf32> -> vector<8x128xf32>
    %cst_45 = arith.constant dense<0.000000e+00> : vector<8x128xf32>
    %236 = tpu.matmul %213, %6, %cst_45 {dimension_numbers = #tpu.dot_dimension_numbers<[1], [0], [0], [1], [0, 0, 1, 1], [], []>} : vector<8x32xf32>, vector<32x128xf32>, vector<8x128xf32> -> vector<8x128xf32>
    %237 = arith.addf %235, %236 : vector<8x128xf32>
    %238 = arith.addf %237, %12 : vector<8x128xf32>
    %239 = arith.negf %238 : vector<8x128xf32>
    %240 = math.exp %239 : vector<8x128xf32>
    %cst_46 = arith.constant 1.000000e+00 : f32
    %241 = vector.broadcast %cst_46 : f32 to vector<8x128xf32>
    %242 = arith.addf %241, %240 : vector<8x128xf32>
    %243 = arith.divf %241, %242 : vector<8x128xf32>
    %244 = math.tanh %238 : vector<8x128xf32>
    %245 = vector.extract_strided_slice %243 {offsets = [0, 0], sizes = [8, 32], strides = [1, 1]} : vector<8x128xf32> to vector<8x32xf32>
    %246 = vector.extract_strided_slice %243 {offsets = [0, 32], sizes = [8, 32], strides = [1, 1]} : vector<8x128xf32> to vector<8x32xf32>
    %247 = vector.extract_strided_slice %244 {offsets = [0, 64], sizes = [8, 32], strides = [1, 1]} : vector<8x128xf32> to vector<8x32xf32>
    %248 = vector.extract_strided_slice %243 {offsets = [0, 96], sizes = [8, 32], strides = [1, 1]} : vector<8x128xf32> to vector<8x32xf32>
    %249 = arith.mulf %246, %211 : vector<8x32xf32>
    %250 = arith.mulf %245, %247 : vector<8x32xf32>
    %251 = arith.addf %249, %250 : vector<8x32xf32>
    %252 = math.tanh %251 : vector<8x32xf32>
    %253 = arith.mulf %248, %252 : vector<8x32xf32>
    %c0_47 = arith.constant 0 : index
    %c6 = arith.constant 6 : index
    %254 = vector.load %arg0[%c0_47, %c6] : memref<8x8xf32, #tpu.memory_space<vmem>>, vector<8x1xf32>
    %255 = vector.broadcast %254 : vector<8x1xf32> to vector<8x128xf32>
    %256 = arith.mulf %255, %8 : vector<8x128xf32>
    %257 = arith.addf %256, %10 : vector<8x128xf32>
    %cst_48 = arith.constant dense<0.000000e+00> : vector<8x128xf32>
    %258 = tpu.matmul %234, %4, %cst_48 {dimension_numbers = #tpu.dot_dimension_numbers<[1], [0], [0], [1], [0, 0, 1, 1], [], []>} : vector<8x32xf32>, vector<32x128xf32>, vector<8x128xf32> -> vector<8x128xf32>
    %259 = arith.addf %257, %258 : vector<8x128xf32>
    %260 = arith.negf %259 : vector<8x128xf32>
    %261 = math.exp %260 : vector<8x128xf32>
    %cst_49 = arith.constant 1.000000e+00 : f32
    %262 = vector.broadcast %cst_49 : f32 to vector<8x128xf32>
    %263 = arith.addf %262, %261 : vector<8x128xf32>
    %264 = arith.divf %262, %263 : vector<8x128xf32>
    %265 = math.tanh %259 : vector<8x128xf32>
    %266 = vector.extract_strided_slice %264 {offsets = [0, 0], sizes = [8, 32], strides = [1, 1]} : vector<8x128xf32> to vector<8x32xf32>
    %267 = vector.extract_strided_slice %264 {offsets = [0, 32], sizes = [8, 32], strides = [1, 1]} : vector<8x128xf32> to vector<8x32xf32>
    %268 = vector.extract_strided_slice %265 {offsets = [0, 64], sizes = [8, 32], strides = [1, 1]} : vector<8x128xf32> to vector<8x32xf32>
    %269 = vector.extract_strided_slice %264 {offsets = [0, 96], sizes = [8, 32], strides = [1, 1]} : vector<8x128xf32> to vector<8x32xf32>
    %270 = arith.mulf %267, %232 : vector<8x32xf32>
    %271 = arith.mulf %266, %268 : vector<8x32xf32>
    %272 = arith.addf %270, %271 : vector<8x32xf32>
    %273 = math.tanh %272 : vector<8x32xf32>
    %274 = arith.mulf %269, %273 : vector<8x32xf32>
    %cst_50 = arith.constant dense<0.000000e+00> : vector<8x128xf32>
    %275 = tpu.matmul %274, %5, %cst_50 {dimension_numbers = #tpu.dot_dimension_numbers<[1], [0], [0], [1], [0, 0, 1, 1], [], []>} : vector<8x32xf32>, vector<32x128xf32>, vector<8x128xf32> -> vector<8x128xf32>
    %cst_51 = arith.constant dense<0.000000e+00> : vector<8x128xf32>
    %276 = tpu.matmul %253, %6, %cst_51 {dimension_numbers = #tpu.dot_dimension_numbers<[1], [0], [0], [1], [0, 0, 1, 1], [], []>} : vector<8x32xf32>, vector<32x128xf32>, vector<8x128xf32> -> vector<8x128xf32>
    %277 = arith.addf %275, %276 : vector<8x128xf32>
    %278 = arith.addf %277, %12 : vector<8x128xf32>
    %279 = arith.negf %278 : vector<8x128xf32>
    %280 = math.exp %279 : vector<8x128xf32>
    %cst_52 = arith.constant 1.000000e+00 : f32
    %281 = vector.broadcast %cst_52 : f32 to vector<8x128xf32>
    %282 = arith.addf %281, %280 : vector<8x128xf32>
    %283 = arith.divf %281, %282 : vector<8x128xf32>
    %284 = math.tanh %278 : vector<8x128xf32>
    %285 = vector.extract_strided_slice %283 {offsets = [0, 0], sizes = [8, 32], strides = [1, 1]} : vector<8x128xf32> to vector<8x32xf32>
    %286 = vector.extract_strided_slice %283 {offsets = [0, 32], sizes = [8, 32], strides = [1, 1]} : vector<8x128xf32> to vector<8x32xf32>
    %287 = vector.extract_strided_slice %284 {offsets = [0, 64], sizes = [8, 32], strides = [1, 1]} : vector<8x128xf32> to vector<8x32xf32>
    %288 = vector.extract_strided_slice %283 {offsets = [0, 96], sizes = [8, 32], strides = [1, 1]} : vector<8x128xf32> to vector<8x32xf32>
    %289 = arith.mulf %286, %251 : vector<8x32xf32>
    %290 = arith.mulf %285, %287 : vector<8x32xf32>
    %291 = arith.addf %289, %290 : vector<8x32xf32>
    %292 = math.tanh %291 : vector<8x32xf32>
    %293 = arith.mulf %288, %292 : vector<8x32xf32>
    %c0_53 = arith.constant 0 : index
    %c7 = arith.constant 7 : index
    %294 = vector.load %arg0[%c0_53, %c7] : memref<8x8xf32, #tpu.memory_space<vmem>>, vector<8x1xf32>
    %295 = vector.broadcast %294 : vector<8x1xf32> to vector<8x128xf32>
    %296 = arith.mulf %295, %8 : vector<8x128xf32>
    %297 = arith.addf %296, %10 : vector<8x128xf32>
    %cst_54 = arith.constant dense<0.000000e+00> : vector<8x128xf32>
    %298 = tpu.matmul %274, %4, %cst_54 {dimension_numbers = #tpu.dot_dimension_numbers<[1], [0], [0], [1], [0, 0, 1, 1], [], []>} : vector<8x32xf32>, vector<32x128xf32>, vector<8x128xf32> -> vector<8x128xf32>
    %299 = arith.addf %297, %298 : vector<8x128xf32>
    %300 = arith.negf %299 : vector<8x128xf32>
    %301 = math.exp %300 : vector<8x128xf32>
    %cst_55 = arith.constant 1.000000e+00 : f32
    %302 = vector.broadcast %cst_55 : f32 to vector<8x128xf32>
    %303 = arith.addf %302, %301 : vector<8x128xf32>
    %304 = arith.divf %302, %303 : vector<8x128xf32>
    %305 = math.tanh %299 : vector<8x128xf32>
    %306 = vector.extract_strided_slice %304 {offsets = [0, 0], sizes = [8, 32], strides = [1, 1]} : vector<8x128xf32> to vector<8x32xf32>
    %307 = vector.extract_strided_slice %304 {offsets = [0, 32], sizes = [8, 32], strides = [1, 1]} : vector<8x128xf32> to vector<8x32xf32>
    %308 = vector.extract_strided_slice %305 {offsets = [0, 64], sizes = [8, 32], strides = [1, 1]} : vector<8x128xf32> to vector<8x32xf32>
    %309 = vector.extract_strided_slice %304 {offsets = [0, 96], sizes = [8, 32], strides = [1, 1]} : vector<8x128xf32> to vector<8x32xf32>
    %310 = arith.mulf %307, %272 : vector<8x32xf32>
    %311 = arith.mulf %306, %308 : vector<8x32xf32>
    %312 = arith.addf %310, %311 : vector<8x32xf32>
    %313 = math.tanh %312 : vector<8x32xf32>
    %314 = arith.mulf %309, %313 : vector<8x32xf32>
    %cst_56 = arith.constant dense<0.000000e+00> : vector<8x128xf32>
    %315 = tpu.matmul %314, %5, %cst_56 {dimension_numbers = #tpu.dot_dimension_numbers<[1], [0], [0], [1], [0, 0, 1, 1], [], []>} : vector<8x32xf32>, vector<32x128xf32>, vector<8x128xf32> -> vector<8x128xf32>
    %cst_57 = arith.constant dense<0.000000e+00> : vector<8x128xf32>
    %316 = tpu.matmul %293, %6, %cst_57 {dimension_numbers = #tpu.dot_dimension_numbers<[1], [0], [0], [1], [0, 0, 1, 1], [], []>} : vector<8x32xf32>, vector<32x128xf32>, vector<8x128xf32> -> vector<8x128xf32>
    %317 = arith.addf %315, %316 : vector<8x128xf32>
    %318 = arith.addf %317, %12 : vector<8x128xf32>
    %319 = arith.negf %318 : vector<8x128xf32>
    %320 = math.exp %319 : vector<8x128xf32>
    %cst_58 = arith.constant 1.000000e+00 : f32
    %321 = vector.broadcast %cst_58 : f32 to vector<8x128xf32>
    %322 = arith.addf %321, %320 : vector<8x128xf32>
    %323 = arith.divf %321, %322 : vector<8x128xf32>
    %324 = math.tanh %318 : vector<8x128xf32>
    %325 = vector.extract_strided_slice %323 {offsets = [0, 0], sizes = [8, 32], strides = [1, 1]} : vector<8x128xf32> to vector<8x32xf32>
    %326 = vector.extract_strided_slice %323 {offsets = [0, 32], sizes = [8, 32], strides = [1, 1]} : vector<8x128xf32> to vector<8x32xf32>
    %327 = vector.extract_strided_slice %324 {offsets = [0, 64], sizes = [8, 32], strides = [1, 1]} : vector<8x128xf32> to vector<8x32xf32>
    %328 = vector.extract_strided_slice %323 {offsets = [0, 96], sizes = [8, 32], strides = [1, 1]} : vector<8x128xf32> to vector<8x32xf32>
    %329 = arith.mulf %326, %291 : vector<8x32xf32>
    %330 = arith.mulf %325, %327 : vector<8x32xf32>
    %331 = arith.addf %329, %330 : vector<8x32xf32>
    %332 = math.tanh %331 : vector<8x32xf32>
    %333 = arith.mulf %328, %332 : vector<8x32xf32>
    %334 = vector.extract_strided_slice %3 {offsets = [0, 0], sizes = [1, 32], strides = [1, 1]} : vector<1x128xf32> to vector<1x32xf32>
    %335 = vector.broadcast %334 : vector<1x32xf32> to vector<8x32xf32>
    %336 = arith.mulf %333, %335 : vector<8x32xf32>
    %cst_59 = arith.constant dense<0.000000e+00> : vector<8xf32>
    %337 = vector.multi_reduction <add>, %336, %cst_59 [1] : vector<8x32xf32> to vector<8xf32>
    %338 = vector.shape_cast %337 : vector<8xf32> to vector<8x1xf32>
    %339 = vector.extract_strided_slice %3 {offsets = [0, 32], sizes = [1, 1], strides = [1, 1]} : vector<1x128xf32> to vector<1x1xf32>
    %340 = vector.broadcast %339 : vector<1x1xf32> to vector<8x1xf32>
    %341 = arith.addf %338, %340 : vector<8x1xf32>
    %342 = vector.extract_strided_slice %341 {offsets = [0, 0], sizes = [2, 1], strides = [1, 1]} : vector<8x1xf32> to vector<2x1xf32>
    %c0_60 = arith.constant 0 : index
    %c0_61 = arith.constant 0 : index
    %343 = vector.load %arg2[%c0_60, %c0_61] : memref<2x1xf32, #tpu.memory_space<vmem>>, vector<2x1xf32>
    tpu.vector_store %arg2[%c0_60, %c0_61], %342 {strides = array<i32>} : memref<2x1xf32, #tpu.memory_space<vmem>>, vector<2x1xf32>,
    return
  }
}

</mosaic_0001>

<bundles_post_ra>
// kernel: tpu_custom_call.1
= control target key start
LH: loop header
LB: loop body
LE: loop exit
PB: predicated region body
PF: predicated region fallthrough
CT: control target
= control target key end

     0   :  { %7 = vsyncpa [#allocation3], 0  ;;  %s1903_s0 = inlined_call_operand.hbm [shape: f32[8,8], index: 0, kind: input, shape index: {}]   ;;  %s1904_s1 = inlined_call_operand.hbm [shape: f32[104,128], index: 1, kind: input, shape index: {}]   ;;  %s1905_s2 = inlined_call_operand.vmem [shape: f32[2,1], index: 2, kind: output, shape index: {}]  }
   0x1   :  { %s14_s11 = sshll.u32 %s1903_s0, 4  ;;  %s15_s11 = int_to_ptr.hbm [resolvable:$true] %s14_s11 }
   0x2   :  { %8 = vsyncpa [#allocation5], 0  ;;  %s1554_s12 = smov [#allocation2]   ;;  %s24_s16 = sshll.u32 %s1904_s1, 4  ;;  %s25_s16 = int_to_ptr.hbm [resolvable:$true] %s24_s16 }
   0x3   :  { %s16_s13 = sshll.u32 %s1554_s12, 4  ;;  %s1555_s17 = smov [#allocation4]   ;;  %s17_s13 = int_to_ptr.vmem [resolvable:$true] %s16_s13 }
   0x4   :  { %19 = dma.hbm_to_vmem [thread:$0]  %s15_s11, 128, %s17_s13, [#allocation3]  }
   0x5   :  { %s26_s18 = sshll.u32 %s1555_s17, 4  ;;  %s1556_s19 = smov 128   ;;  %s27_s18 = int_to_ptr.vmem [resolvable:$true] %s26_s18 }
   0x6   :  { %s1557_s20 = smov 8  }
   0x7   :  { %32 = dma.hbm_to_vmem [thread:$0]  %s25_s16, 1664, %s27_s18, [#allocation5], %s1556_s19, %s1556_s19, %s1557_s20  }
   0x8   :  { %1550 = dma.done.wait [#allocation3], 128  }
   0x9   :  { %1551 = vsyncadd [#allocation3], 4294967168 }
   0xa   :  { %1552 = dma.done.wait [#allocation5], 1664  }
   0xb   :  { %1553 = vsyncadd [#allocation5], 4294965632  ;;  %v1558_v0 = vmov 0   ;;  %v1591_v1 = vld [vmem:[#allocation4 + $0x20] sm:$0xff]  ;;  %v1593_v2 = vld [vmem:[#allocation4 + $0x18] sm:$0xff]  ;;  %v1559_v6 = vmov 0.0  }
   0xc   :  { %1357 = vset.pattern.permute.xlu0 %v1558_v0  ;;  %84 = vmatpush.msra.mxu0 %v1591_v1  ;;  %v1596_v3 = vld [vmem:[#allocation4 + $0x10] sm:$0xff]  ;;  %v1598_v4 = vld [vmem:[#allocation2] sm:$0xff]  ;;  %v1604_v5 = vld [vmem:[#allocation4 + $0x8] sm:$0xff]  ;;  %s1560_s0 = smov 64   ;;  %s1561_s1 = smov 32   ;;  %v1562_v43 = vmov 1  }
   0xd   :  { %231 = vmatpush.msra.mxu3 %v1591_v1  ;;  %63 = vperm.xlu0 %1357, %v1598_v4   ;;  %v1611_v7 = vld [vmem:[#allocation4] ss:$0 sm:$0xff]  ;;  %v1614_v10 = vld [vmem:[#allocation4 + $0x1] ss:$0 sm:$0xff]  ;;  %v1625_v35 = vld [vmem:[#allocation4 + $0x38] sm:$0xff]  ;;  %vm68_vm4 = vcmask 261120  }
   0xe   :  { %85 = vmatpush.msra.mxu0 %v1593_v2  ;;  %v1623_v34 = vld [vmem:[#allocation4 + $0x40] sm:$0xff]  ;;  %v1630_v37 = vld [vmem:[#allocation4 + $0x30] sm:$0xff]  ;;  %v1636_v38 = vld [vmem:[#allocation4 + $0x28] sm:$0xff]  ;;  %1358 = vset.pattern.permute.xlu2 %v1562_v43  ;;  %s1569_s21 = smov 96  }
   0xf   :  { %232 = vmatpush.msra.mxu3 %v1593_v2  ;;  %167 = vmatpush.msra.mxu2 %v1623_v34  ;;  %v1628_v36 = vld [vmem:[#allocation4 + $0x60] sm:$0xff]  ;;  %v1645_v41 = vld [vmem:[#allocation4 + $0x58] sm:$0xff]  ;;  %v1647_v42 = vld [vmem:[#allocation4 + $0x50] sm:$0xff] }
  0x10   :  { %86 = vmatpush.msra.mxu0 %v1596_v3  ;;  %142 = vmatpush.msra.mxu1 %v1628_v36  ;;  %v1650_v44 = vld [vmem:[#allocation4 + $0x48] sm:$0xff]  ;;  %v1686_v50 = vld [vmem:[#allocation4 + $0x2] ss:$0 sm:$0xff] }
  0x11   :  { %233 = vmatpush.msra.mxu3 %v1596_v3  ;;  %168 = vmatpush.msra.mxu2 %v1625_v35 }
  0x12   :  { %87 = vmatpush.msra.mxu0 %v1604_v5  ;;  %143 = vmatpush.msra.mxu1 %v1645_v41 }
  0x13   :  { %234 = vmatpush.msra.mxu3 %v1604_v5  ;;  %88 = vmatmul.f32.vlgmr.msra.gmra.mxu0 %v1559_v6 }
  0x14   :  { %294 = vmatpush.msrb.mxu0 %v1628_v36  ;;  %169 = vmatpush.msra.mxu2 %v1630_v37 }
  0x15   :  { %446 = vmatpush.msrb.mxu3 %v1628_v36  ;;  %144 = vmatpush.msra.mxu1 %v1647_v42 }
  0x16   :  { %170 = vmatpush.msra.mxu2 %v1636_v38  ;;  %295 = vmatpush.msrb.mxu0 %v1645_v41 }
  0x17   :  { %447 = vmatpush.msrb.mxu3 %v1645_v41  ;;  %145 = vmatpush.msra.mxu1 %v1650_v44 }
  0x18   :  { %383 = vmatpush.msrb.mxu2 %v1591_v1  ;;  %296 = vmatpush.msrb.mxu0 %v1647_v42 }
  0x19   :  { %448 = vmatpush.msrb.mxu3 %v1647_v42  ;;  %146 = vmatmul.f32.vlgmr.msra.gmra.mxu1 %v1559_v6 }
  0x1a   :  { %384 = vmatpush.msrb.mxu2 %v1593_v2  ;;  %297 = vmatpush.msrb.mxu0 %v1650_v44 }
  0x1b   :  { %319 = vmatpush.msrb.mxu1 %v1623_v34  ;;  %449 = vmatpush.msrb.mxu3 %v1650_v44 }
  0x1c   :  { %385 = vmatpush.msrb.mxu2 %v1596_v3  ;;  %471 = vmatpush.msra.mxu0 %v1623_v34 }
  0x1d   :  { %320 = vmatpush.msrb.mxu1 %v1625_v35 }
  0x1e   :  { %386 = vmatpush.msrb.mxu2 %v1604_v5  ;;  %472 = vmatpush.msra.mxu0 %v1625_v35 }
  0x1f   :  { %321 = vmatpush.msrb.mxu1 %v1630_v37 }
  0x20   :  { %473 = vmatpush.msra.mxu0 %v1630_v37 }
  0x21   :  { %322 = vmatpush.msrb.mxu1 %v1636_v38 }
  0x22   :  { %474 = vmatpush.msra.mxu0 %v1636_v38 }
  0x23   :  { %535 = vmatpush.msra.mxu1 %v1591_v1 }
  0x25   :  { %536 = vmatpush.msra.mxu1 %v1593_v2 }
  0x27   :  { %537 = vmatpush.msra.mxu1 %v1596_v3 }
  0x29   :  { %538 = vmatpush.msra.mxu1 %v1604_v5 }
  0x7f   :  { %v64_v8 = vpop.permute.xlu0 %63 }
  0x80   :  { %v66_v9 = vmul.f32 %v1611_v7, %v64_v8 }
  0x82   :  { %v67_v11 = vadd.f32 %v1614_v10, %v66_v9 }
  0x90   :  { %v89_v12 = vpop.f32.mrf.mxu0 }
  0x91   :  { %v92_v13 = vadd.f32 %v89_v12, %v67_v11 }
  0x93   :  { %1370 = vtanh.f32 %v92_v13  ;;  %v1303_v15 = vmul.f32 -1.442695, %v92_v13 }
  0x95   :  { %1372 = vpow2.f32 %v1303_v15 }
  0x96   :  { %v147_v49 = vpop.f32.mrf.mxu1 }
  0x99   :  { %v1371_v14 = vpop.eup %1370 }
  0x9a   :  { %115 = vrot.lane.b32.xlu0 %v1371_v14, %s1560_s0 }
  0x9b   :  { %v1373_v16 = vpop.eup %1372 }
  0x9c   :  { %v96_v17 = vadd.f32 1.0, %v1373_v16 }
  0x9e   :  { %1374 = vrcp.f32 %v96_v17  ;;  %v108_v23 = vand.u32 2147483648, %v96_v17  ;;  %vm102_vm1 = vweird.f32 %v96_v17  ;;  %v106_v24 = vand.u32 2147483647, %v96_v17 }
  0xa0   :  { %v109_v26 = vor.u32 1.1754944e-38, %v108_v23  ;;  %vm107_vm3 = vcmp.eq.f32.partialorder %v106_v24, 8.507059e+37 }
  0xa4   :  { %v1375_v18 = vpop.eup %1374 }
  0xa5   :  { %v98_v19 = vmul.f32 %v1375_v18, %v96_v17  ;;  %vm103_vm0 = vweird.f32 %v1375_v18 }
  0xa6   :  { %vm104_vm2 = vmor %vm102_vm1, %vm103_vm0 }
  0xa7   :  { %v99_v20 = vsub.f32 1.0, %v98_v19 }
  0xa9   :  { %v100_v21 = vmul.f32 %v1375_v18, %v99_v20 }
  0xab   :  { %v101_v22 = vadd.f32 %v1375_v18, %v100_v21 }
  0xad   :  { %v105_v25 = vsel %vm104_vm2, %v1375_v18, %v101_v22 }
  0xae   :  { %v110_v28 = vsel %vm107_vm3, %v109_v26, %v105_v25 }
  0xaf   :  { %v113_v30 = vmul.f32 0.0, %v110_v28 }
 0x10c   :  { %v116_v27 = vpop.permute.xlu0 %115 }
 0x10d   :  { %v118_v29 = vmul.f32 %v116_v27, %v110_v28 }
 0x10f   :  { %120 = vrot.lane.b32.xlu1 %v118_v29, %s1561_s1 }
 0x181   :  { %v121_v31 = vpop.permute.xlu1 %120 }
 0x182   :  { %v1619_v32 = vadd.f32 %v121_v31, %v113_v30 }
 0x184   :  { %1376 = vtanh.f32 %v1619_v32 }
 0x18a   :  { %v1377_v33 = vpop.eup %1376 }
 0x18b   :  { %126 = vrot.lane.b32.xlu1 %v1377_v33, %s1560_s0 }
 0x1fd   :  { %v127_v39 = vpop.permute.xlu1 %126 }
 0x1fe   :  { %v129_v40 = vmul.f32 %v127_v39, %v110_v28 }
 0x200   :  { %151 = vrot.lane.b32.xlu2 %v129_v40, %s1561_s1 }
 0x208   :  { %214 = vperm.xlu2 %1358, %v1598_v4  }
 0x25a   :  { %v152_v45 = vpop.permute.xlu2 %151 }
 0x25b   :  { %1304 = vmatmul.msk.f32.vlgmr.msra.gmra.mxu2 %vm68_vm4, %v152_v45  ;;  %1306 = vmatmul.msk.f32.vlgmr.msra.gmra.mxu3 %vm68_vm4, %v152_v45 }
 0x25c   :  { %623 = vmatpush.msra.mxu3 %v1623_v34  ;;  %598 = vmatpush.msra.mxu2 %v1628_v36 }
 0x25e   :  { %624 = vmatpush.msra.mxu3 %v1625_v35  ;;  %599 = vmatpush.msra.mxu2 %v1645_v41 }
 0x260   :  { %625 = vmatpush.msra.mxu3 %v1630_v37  ;;  %600 = vmatpush.msra.mxu2 %v1647_v42 }
 0x262   :  { %626 = vmatpush.msra.mxu3 %v1636_v38  ;;  %601 = vmatpush.msra.mxu2 %v1650_v44  ;;  %v215_v46 = vpop.permute.xlu2 %214 }
 0x263   :  { %v217_v47 = vmul.f32 %v1611_v7, %v215_v46 }
 0x265   :  { %v218_v48 = vadd.f32 %v1614_v10, %v217_v47 }
 0x2de   :  { %v172_v51 = vpop.f32.mrf.mxu2  ;;  %v236_v52 = vpop.f32.mrf.mxu3 }
 0x2df   :  { %v173_v53 = vadd.f32 %v172_v51, %v147_v49  ;;  %v239_v54 = vadd.f32 %v236_v52, %v218_v48 }
 0x2e1   :  { %v175_v55 = vadd.f32 %v1686_v50, %v173_v53  ;;  %1378 = vtanh.f32 %v239_v54  ;;  %v1307_v58 = vmul.f32 -1.442695, %v239_v54  ;;  %v1563_v53 = vmov 2  }
 0x2e2   :  { %1359 = vset.pattern.permute.xlu2 %v1563_v53 }
 0x2e3   :  { %1380 = vtanh.f32 %v175_v55  ;;  %v1305_v59 = vmul.f32 -1.442695, %v175_v55 }
 0x2e4   :  { %1382 = vpow2.f32 %v1307_v58 }
 0x2e5   :  { %1384 = vpow2.f32 %v1305_v59 }
 0x2e7   :  { %v1379_v56 = vpop.eup %1378 }
 0x2e8   :  { %262 = vrot.lane.b32.xlu1 %v1379_v56, %s1560_s0 }
 0x2e9   :  { %v1381_v57 = vpop.eup %1380 }
 0x2ea   :  { %198 = vrot.lane.b32.xlu0 %v1381_v57, %s1560_s0  ;;  %v1383_v60 = vpop.eup %1382 }
 0x2eb   :  { %v1385_v61 = vpop.eup %1384  ;;  %v243_v62 = vadd.f32 1.0, %v1383_v60 }
 0x2ec   :  { %v179_v63 = vadd.f32 1.0, %v1385_v61 }
 0x2ed   :  { %1386 = vrcp.f32 %v243_v62  ;;  %v255_v16 = vand.u32 2147483648, %v243_v62  ;;  %vm249_vm6 = vweird.f32 %v243_v62  ;;  %v253_v17 = vand.u32 2147483647, %v243_v62 }
 0x2ee   :  { %1388 = vrcp.f32 %v179_v63  ;;  %v191_v19 = vand.u32 2147483648, %v179_v63  ;;  %vm185_vm9 = vweird.f32 %v179_v63  ;;  %v189_v21 = vand.u32 2147483647, %v179_v63 }
 0x2ef   :  { %v256_v22 = vor.u32 1.1754944e-38, %v255_v16  ;;  %vm254_vm11 = vcmp.eq.f32.partialorder %v253_v17, 8.507059e+37 }
 0x2f0   :  { %v192_v26 = vor.u32 1.1754944e-38, %v191_v19  ;;  %vm190_vm12 = vcmp.eq.f32.partialorder %v189_v21, 8.507059e+37 }
 0x2f3   :  { %v1387_v0 = vpop.eup %1386 }
 0x2f4   :  { %v1389_v6 = vpop.eup %1388  ;;  %v245_v8 = vmul.f32 %v1387_v0, %v243_v62  ;;  %vm250_vm5 = vweird.f32 %v1387_v0 }
 0x2f5   :  { %v181_v9 = vmul.f32 %v1389_v6, %v179_v63  ;;  %vm186_vm7 = vweird.f32 %v1389_v6  ;;  %vm251_vm8 = vmor %vm249_vm6, %vm250_vm5 }
 0x2f6   :  { %v246_v11 = vsub.f32 1.0, %v245_v8  ;;  %vm187_vm10 = vmor %vm185_vm9, %vm186_vm7 }
 0x2f7   :  { %v182_v12 = vsub.f32 1.0, %v181_v9 }
 0x2f8   :  { %v247_v13 = vmul.f32 %v1387_v0, %v246_v11 }
 0x2f9   :  { %v183_v14 = vmul.f32 %v1389_v6, %v182_v12 }
 0x2fa   :  { %v248_v15 = vadd.f32 %v1387_v0, %v247_v13 }
 0x2fb   :  { %v184_v18 = vadd.f32 %v1389_v6, %v183_v14 }
 0x2fc   :  { %v252_v20 = vsel %vm251_vm8, %v1387_v0, %v248_v15 }
 0x2fd   :  { %v188_v23 = vsel %vm187_vm10, %v1389_v6, %v184_v18  ;;  %v257_v25 = vsel %vm254_vm11, %v256_v22, %v252_v20 }
 0x2fe   :  { %v193_v29 = vsel %vm190_vm12, %v192_v26, %v188_v23  ;;  %v260_v43 = vmul.f32 %v257_v25, %v1619_v32 }
 0x2ff   :  { %v196_v31 = vmul.f32 0.0, %v193_v29 }
 0x35a   :  { %v263_v24 = vpop.permute.xlu1 %262 }
 0x35b   :  { %v265_v27 = vmul.f32 %v263_v24, %v257_v25 }
 0x35c   :  { %v199_v28 = vpop.permute.xlu0 %198 }
 0x35d   :  { %v201_v30 = vmul.f32 %v199_v28, %v193_v29  ;;  %267 = vrot.lane.b32.xlu0 %v265_v27, %s1561_s1 }
 0x35f   :  { %203 = vrot.lane.b32.xlu2 %v201_v30, %s1561_s1 }
 0x3b9   :  { %v204_v33 = vpop.permute.xlu2 %203 }
 0x3ba   :  { %v1693_v39 = vadd.f32 %v204_v33, %v196_v31 }
 0x3bc   :  { %1390 = vtanh.f32 %v1693_v39 }
 0x3c2   :  { %v1391_v40 = vpop.eup %1390 }
 0x3c3   :  { %209 = vrot.lane.b32.xlu1 %v1391_v40, %s1560_s0 }
 0x3cf   :  { %v268_v45 = vpop.permute.xlu0 %267 }
 0x3d0   :  { %v1698_v46 = vadd.f32 %v268_v45, %v260_v43 }
 0x3d2   :  { %1392 = vtanh.f32 %v1698_v46 }
 0x3d8   :  { %v1393_v47 = vpop.eup %1392 }
 0x3d9   :  { %273 = vrot.lane.b32.xlu2 %v1393_v47, %s1560_s0 }
 0x3e1   :  { %366 = vperm.xlu2 %1359, %v1598_v4  }
 0x433   :  { %v274_v48 = vpop.permute.xlu2 %273 }
 0x434   :  { %v276_v49 = vmul.f32 %v274_v48, %v257_v25 }
 0x435   :  { %v210_v51 = vpop.permute.xlu1 %209 }
 0x436   :  { %v212_v52 = vmul.f32 %v210_v51, %v193_v29  ;;  %303 = vrot.lane.b32.xlu1 %v276_v49, %s1561_s1 }
 0x438   :  { %278 = vrot.lane.b32.xlu0 %v212_v52, %s1561_s1 }
 0x43b   :  { %v367_v55 = vpop.permute.xlu2 %366 }
 0x43c   :  { %v369_v56 = vmul.f32 %v1611_v7, %v367_v55 }
 0x43e   :  { %v370_v60 = vadd.f32 %v1614_v10, %v369_v56 }
 0x4a8   :  { %v304_v32 = vpop.permute.xlu1 %303 }
 0x4a9   :  { %1309 = vmatmul.msk.f32.vlgmr.msrb.gmra.mxu1 %vm68_vm4, %v304_v32  ;;  %1311 = vmatmul.msk.f32.vlgmr.msrb.gmra.mxu2 %vm68_vm4, %v304_v32 }
 0x4aa   :  { %v279_v54 = vpop.permute.xlu0 %278  ;;  %775 = vmatpush.msrb.mxu2 %v1623_v34  ;;  %750 = vmatpush.msrb.mxu1 %v1628_v36 }
 0x4ab   :  { %1308 = vmatmul.msk.f32.vlgmr.msrb.gmra.mxu0 %vm68_vm4, %v279_v54 }
 0x4ac   :  { %687 = vmatpush.msrb.mxu0 %v1591_v1  ;;  %776 = vmatpush.msrb.mxu2 %v1625_v35 }
 0x4ad   :  { %751 = vmatpush.msrb.mxu1 %v1645_v41 }
 0x4ae   :  { %688 = vmatpush.msrb.mxu0 %v1593_v2  ;;  %777 = vmatpush.msrb.mxu2 %v1630_v37 }
 0x4af   :  { %752 = vmatpush.msrb.mxu1 %v1647_v42 }
 0x4b0   :  { %689 = vmatpush.msrb.mxu0 %v1596_v3  ;;  %778 = vmatpush.msrb.mxu2 %v1636_v38 }
 0x4b1   :  { %753 = vmatpush.msrb.mxu1 %v1650_v44 }
 0x4b2   :  { %690 = vmatpush.msrb.mxu0 %v1604_v5 }
 0x526   :  { %v324_v57 = vpop.f32.mrf.mxu1 }
 0x528   :  { %v299_v58 = vpop.f32.mrf.mxu0 }
 0x529   :  { %v325_v59 = vadd.f32 %v324_v57, %v299_v58 }
 0x52b   :  { %v327_v61 = vadd.f32 %v1686_v50, %v325_v59 }
 0x52c   :  { %v388_v62 = vpop.f32.mrf.mxu2 }
 0x52d   :  { %1394 = vtanh.f32 %v327_v61  ;;  %v391_v63 = vadd.f32 %v388_v62, %v370_v60  ;;  %v1310_v8 = vmul.f32 -1.442695, %v327_v61  ;;  %v1564_v61 = vmov 3  }
 0x52e   :  { %1360 = vset.pattern.permute.xlu2 %v1564_v61 }
 0x52f   :  { %1396 = vtanh.f32 %v391_v63  ;;  %v1312_v9 = vmul.f32 -1.442695, %v391_v63 }
 0x530   :  { %1398 = vpow2.f32 %v1310_v8 }
 0x531   :  { %1400 = vpow2.f32 %v1312_v9 }
 0x533   :  { %v1395_v0 = vpop.eup %1394 }
 0x534   :  { %350 = vrot.lane.b32.xlu0 %v1395_v0, %s1560_s0 }
 0x535   :  { %v1397_v6 = vpop.eup %1396 }
 0x536   :  { %414 = vrot.lane.b32.xlu1 %v1397_v6, %s1560_s0  ;;  %v1399_v11 = vpop.eup %1398 }
 0x537   :  { %v1401_v12 = vpop.eup %1400  ;;  %v331_v13 = vadd.f32 1.0, %v1399_v11 }
 0x538   :  { %v395_v14 = vadd.f32 1.0, %v1401_v12 }
 0x539   :  { %1402 = vrcp.f32 %v331_v13  ;;  %v343_v24 = vand.u32 2147483648, %v331_v13  ;;  %vm337_vm14 = vweird.f32 %v331_v13  ;;  %v341_v25 = vand.u32 2147483647, %v331_v13 }
 0x53a   :  { %1404 = vrcp.f32 %v395_v14  ;;  %v407_v28 = vand.u32 2147483648, %v395_v14  ;;  %vm401_vm1 = vweird.f32 %v395_v14  ;;  %v405_v30 = vand.u32 2147483647, %v395_v14 }
 0x53b   :  { %v344_v29 = vor.u32 1.1754944e-38, %v343_v24  ;;  %vm342_vm2 = vcmp.eq.f32.partialorder %v341_v25, 8.507059e+37 }
 0x53c   :  { %v408_v45 = vor.u32 1.1754944e-38, %v407_v28  ;;  %vm406_vm5 = vcmp.eq.f32.partialorder %v405_v30, 8.507059e+37 }
 0x53f   :  { %v1403_v15 = vpop.eup %1402 }
 0x540   :  { %v1405_v16 = vpop.eup %1404  ;;  %v333_v17 = vmul.f32 %v1403_v15, %v331_v13  ;;  %vm338_vm13 = vweird.f32 %v1403_v15 }
 0x541   :  { %v397_v18 = vmul.f32 %v1405_v16, %v395_v14  ;;  %vm339_vm15 = vmor %vm337_vm14, %vm338_vm13  ;;  %vm402_vm0 = vweird.f32 %v1405_v16 }
 0x542   :  { %v334_v19 = vsub.f32 1.0, %v333_v17  ;;  %vm403_vm3 = vmor %vm401_vm1, %vm402_vm0 }
 0x543   :  { %v398_v20 = vsub.f32 1.0, %v397_v18 }
 0x544   :  { %v335_v21 = vmul.f32 %v1403_v15, %v334_v19 }
 0x545   :  { %v399_v22 = vmul.f32 %v1405_v16, %v398_v20 }
 0x546   :  { %v336_v23 = vadd.f32 %v1403_v15, %v335_v21 }
 0x547   :  { %v400_v26 = vadd.f32 %v1405_v16, %v399_v22 }
 0x548   :  { %v340_v27 = vsel %vm339_vm15, %v1403_v15, %v336_v23 }
 0x549   :  { %v345_v33 = vsel %vm342_vm2, %v344_v29, %v340_v27  ;;  %v404_v40 = vsel %vm403_vm3, %v1405_v16, %v400_v26 }
 0x54a   :  { %v409_v48 = vsel %vm406_vm5, %v408_v45, %v404_v40  ;;  %v348_v51 = vmul.f32 %v345_v33, %v1693_v39 }
 0x54b   :  { %v412_v54 = vmul.f32 %v409_v48, %v1698_v46 }
 0x5a6   :  { %v351_v31 = vpop.permute.xlu0 %350 }
 0x5a7   :  { %v353_v43 = vmul.f32 %v351_v31, %v345_v33 }
 0x5a8   :  { %v415_v47 = vpop.permute.xlu1 %414 }
 0x5a9   :  { %355 = vrot.lane.b32.xlu2 %v353_v43, %s1561_s1  ;;  %v417_v49 = vmul.f32 %v415_v47, %v409_v48 }
 0x5ab   :  { %419 = vrot.lane.b32.xlu0 %v417_v49, %s1561_s1 }
 0x603   :  { %v356_v52 = vpop.permute.xlu2 %355 }
 0x604   :  { %v1728_v53 = vadd.f32 %v356_v52, %v348_v51 }
 0x606   :  { %1406 = vtanh.f32 %v1728_v53 }
 0x60c   :  { %v1407_v32 = vpop.eup %1406 }
 0x60d   :  { %361 = vrot.lane.b32.xlu1 %v1407_v32, %s1560_s0 }
 0x61d   :  { %v420_v55 = vpop.permute.xlu0 %419 }
 0x61e   :  { %v1733_v56 = vadd.f32 %v420_v55, %v412_v54 }
 0x620   :  { %1408 = vtanh.f32 %v1733_v56 }
 0x626   :  { %v1409_v57 = vpop.eup %1408 }
 0x627   :  { %425 = vrot.lane.b32.xlu2 %v1409_v57, %s1560_s0 }
 0x62f   :  { %518 = vperm.xlu2 %1360, %v1598_v4  }
 0x67f   :  { %v362_v58 = vpop.permute.xlu1 %361 }
 0x680   :  { %v364_v39 = vmul.f32 %v362_v58, %v345_v33 }
 0x681   :  { %v426_v59 = vpop.permute.xlu2 %425 }
 0x682   :  { %430 = vrot.lane.b32.xlu0 %v364_v39, %s1561_s1  ;;  %v428_v60 = vmul.f32 %v426_v59, %v409_v48 }
 0x684   :  { %455 = vrot.lane.b32.xlu1 %v428_v60, %s1561_s1 }
 0x689   :  { %v519_v63 = vpop.permute.xlu2 %518 }
 0x68a   :  { %v521_v0 = vmul.f32 %v1611_v7, %v519_v63 }
 0x68c   :  { %v522_v6 = vadd.f32 %v1614_v10, %v521_v0 }
 0x6f4   :  { %v431_v46 = vpop.permute.xlu0 %430 }
 0x6f5   :  { %1313 = vmatmul.msk.f32.vlgmr.msrb.gmra.mxu3 %vm68_vm4, %v431_v46 }
 0x6f6   :  { %839 = vmatpush.msrb.mxu3 %v1591_v1  ;;  %v456_v62 = vpop.permute.xlu1 %455 }
 0x6f7   :  { %1314 = vmatmul.msk.f32.vlgmr.msra.gmra.mxu0 %vm68_vm4, %v456_v62  ;;  %1316 = vmatmul.msk.f32.vlgmr.msra.gmra.mxu1 %vm68_vm4, %v456_v62 }
 0x6f8   :  { %840 = vmatpush.msrb.mxu3 %v1593_v2  ;;  %927 = vmatpush.msra.mxu1 %v1623_v34 }
 0x6f9   :  { %902 = vmatpush.msra.mxu0 %v1628_v36 }
 0x6fa   :  { %841 = vmatpush.msrb.mxu3 %v1596_v3  ;;  %928 = vmatpush.msra.mxu1 %v1625_v35 }
 0x6fb   :  { %903 = vmatpush.msra.mxu0 %v1645_v41 }
 0x6fc   :  { %842 = vmatpush.msrb.mxu3 %v1604_v5  ;;  %929 = vmatpush.msra.mxu1 %v1630_v37 }
 0x6fd   :  { %904 = vmatpush.msra.mxu0 %v1647_v42 }
 0x6fe   :  { %930 = vmatpush.msra.mxu1 %v1636_v38 }
 0x6ff   :  { %905 = vmatpush.msra.mxu0 %v1650_v44 }
 0x774   :  { %v540_v8 = vpop.f32.mrf.mxu1  ;;  %v476_v11 = vpop.f32.mrf.mxu0 }
 0x775   :  { %v543_v9 = vadd.f32 %v540_v8, %v522_v6 }
 0x777   :  { %1410 = vtanh.f32 %v543_v9  ;;  %v1317_v17 = vmul.f32 -1.442695, %v543_v9 }
 0x778   :  { %v451_v12 = vpop.f32.mrf.mxu3 }
 0x779   :  { %v477_v13 = vadd.f32 %v476_v11, %v451_v12  ;;  %v1565_v12 = vmov 4  }
 0x77a   :  { %1361 = vset.pattern.permute.xlu2 %v1565_v12 }
 0x77b   :  { %v479_v14 = vadd.f32 %v1686_v50, %v477_v13 }
 0x77d   :  { %1412 = vtanh.f32 %v479_v14  ;;  %v1411_v15 = vpop.eup %1410  ;;  %v1315_v18 = vmul.f32 -1.442695, %v479_v14 }
 0x77e   :  { %566 = vrot.lane.b32.xlu1 %v1411_v15, %s1560_s0  ;;  %1414 = vpow2.f32 %v1317_v17 }
 0x77f   :  { %1416 = vpow2.f32 %v1315_v18 }
 0x783   :  { %v1413_v16 = vpop.eup %1412 }
 0x784   :  { %502 = vrot.lane.b32.xlu0 %v1413_v16, %s1560_s0  ;;  %v1415_v19 = vpop.eup %1414 }
 0x785   :  { %v547_v20 = vadd.f32 1.0, %v1415_v19  ;;  %v1417_v21 = vpop.eup %1416 }
 0x786   :  { %v483_v22 = vadd.f32 1.0, %v1417_v21 }
 0x787   :  { %1418 = vrcp.f32 %v547_v20  ;;  %v559_v31 = vand.u32 2147483648, %v547_v20  ;;  %vm553_vm7 = vweird.f32 %v547_v20  ;;  %v557_v40 = vand.u32 2147483647, %v547_v20 }
 0x788   :  { %1420 = vrcp.f32 %v483_v22  ;;  %v495_v48 = vand.u32 2147483648, %v483_v22  ;;  %vm489_vm11 = vweird.f32 %v483_v22  ;;  %v493_v52 = vand.u32 2147483647, %v483_v22 }
 0x789   :  { %v560_v45 = vor.u32 1.1754944e-38, %v559_v31  ;;  %vm558_vm10 = vcmp.eq.f32.partialorder %v557_v40, 8.507059e+37 }
 0x78a   :  { %v496_v55 = vor.u32 1.1754944e-38, %v495_v48  ;;  %vm494_vm13 = vcmp.eq.f32.partialorder %v493_v52, 8.507059e+37 }
 0x78d   :  { %v1419_v23 = vpop.eup %1418 }
 0x78e   :  { %v549_v24 = vmul.f32 %v1419_v23, %v547_v20  ;;  %v1421_v25 = vpop.eup %1420  ;;  %vm554_vm6 = vweird.f32 %v1419_v23 }
 0x78f   :  { %v485_v27 = vmul.f32 %v1421_v25, %v483_v22  ;;  %vm555_vm8 = vmor %vm553_vm7, %vm554_vm6  ;;  %vm490_vm9 = vweird.f32 %v1421_v25 }
 0x790   :  { %v550_v26 = vsub.f32 1.0, %v549_v24  ;;  %vm491_vm12 = vmor %vm489_vm11, %vm490_vm9 }
 0x791   :  { %v486_v29 = vsub.f32 1.0, %v485_v27 }
 0x792   :  { %v551_v28 = vmul.f32 %v1419_v23, %v550_v26 }
 0x793   :  { %v487_v33 = vmul.f32 %v1421_v25, %v486_v29 }
 0x794   :  { %v552_v30 = vadd.f32 %v1419_v23, %v551_v28 }
 0x795   :  { %v488_v47 = vadd.f32 %v1421_v25, %v487_v33 }
 0x796   :  { %v556_v43 = vsel %vm555_vm8, %v1419_v23, %v552_v30 }
 0x797   :  { %v561_v51 = vsel %vm558_vm10, %v560_v45, %v556_v43  ;;  %v492_v54 = vsel %vm491_vm12, %v1421_v25, %v488_v47 }
 0x798   :  { %v497_v58 = vsel %vm494_vm13, %v496_v55, %v492_v54  ;;  %v564_v62 = vmul.f32 %v561_v51, %v1733_v56 }
 0x799   :  { %v500_v59 = vmul.f32 %v497_v58, %v1728_v53 }
 0x7f0   :  { %v567_v49 = vpop.permute.xlu1 %566 }
 0x7f1   :  { %v569_v32 = vmul.f32 %v567_v49, %v561_v51 }
 0x7f3   :  { %571 = vrot.lane.b32.xlu0 %v569_v32, %s1561_s1 }
 0x7f6   :  { %v503_v57 = vpop.permute.xlu0 %502 }
 0x7f7   :  { %v505_v39 = vmul.f32 %v503_v57, %v497_v58 }
 0x7f9   :  { %507 = vrot.lane.b32.xlu2 %v505_v39, %s1561_s1 }
 0x853   :  { %v508_v60 = vpop.permute.xlu2 %507 }
 0x854   :  { %v1763_v61 = vadd.f32 %v508_v60, %v500_v59 }
 0x856   :  { %1422 = vtanh.f32 %v1763_v61 }
 0x85c   :  { %v1423_v46 = vpop.eup %1422 }
 0x85d   :  { %513 = vrot.lane.b32.xlu1 %v1423_v46, %s1560_s0 }
 0x865   :  { %v572_v63 = vpop.permute.xlu0 %571 }
 0x866   :  { %v1768_v0 = vadd.f32 %v572_v63, %v564_v62 }
 0x868   :  { %1424 = vtanh.f32 %v1768_v0 }
 0x86e   :  { %v1425_v6 = vpop.eup %1424 }
 0x86f   :  { %577 = vrot.lane.b32.xlu2 %v1425_v6, %s1560_s0 }
 0x877   :  { %670 = vperm.xlu2 %1361, %v1598_v4  }
 0x8c9   :  { %v578_v8 = vpop.permute.xlu2 %577 }
 0x8ca   :  { %v580_v53 = vmul.f32 %v578_v8, %v561_v51 }
 0x8cc   :  { %607 = vrot.lane.b32.xlu1 %v580_v53, %s1561_s1 }
 0x8cf   :  { %v514_v9 = vpop.permute.xlu1 %513 }
 0x8d0   :  { %v516_v11 = vmul.f32 %v514_v9, %v497_v58 }
 0x8d1   :  { %v671_v14 = vpop.permute.xlu2 %670 }
 0x8d2   :  { %582 = vrot.lane.b32.xlu0 %v516_v11, %s1561_s1  ;;  %v673_v15 = vmul.f32 %v1611_v7, %v671_v14 }
 0x8d4   :  { %v674_v16 = vadd.f32 %v1614_v10, %v673_v15 }
 0x93e   :  { %v608_v56 = vpop.permute.xlu1 %607 }
 0x93f   :  { %1319 = vmatmul.msk.f32.vlgmr.msra.gmra.mxu3 %vm68_vm4, %v608_v56  ;;  %1321 = vmatmul.msk.f32.vlgmr.msrb.gmra.mxu0 %vm68_vm4, %v608_v56 }
 0x940   :  { %1079 = vmatpush.msrb.mxu0 %v1623_v34  ;;  %1054 = vmatpush.msra.mxu3 %v1628_v36 }
 0x942   :  { %1080 = vmatpush.msrb.mxu0 %v1625_v35  ;;  %1055 = vmatpush.msra.mxu3 %v1645_v41 }
 0x944   :  { %v583_v13 = vpop.permute.xlu0 %582  ;;  %1081 = vmatpush.msrb.mxu0 %v1630_v37  ;;  %1056 = vmatpush.msra.mxu3 %v1647_v42 }
 0x945   :  { %1318 = vmatmul.msk.f32.vlgmr.msra.gmra.mxu2 %vm68_vm4, %v583_v13 }
 0x946   :  { %991 = vmatpush.msra.mxu2 %v1591_v1  ;;  %1082 = vmatpush.msrb.mxu0 %v1636_v38 }
 0x947   :  { %1057 = vmatpush.msra.mxu3 %v1650_v44 }
 0x948   :  { %992 = vmatpush.msra.mxu2 %v1593_v2 }
 0x94a   :  { %993 = vmatpush.msra.mxu2 %v1596_v3 }
 0x94c   :  { %994 = vmatpush.msra.mxu2 %v1604_v5 }
 0x9bc   :  { %v692_v17 = vpop.f32.mrf.mxu0 }
 0x9bd   :  { %v695_v18 = vadd.f32 %v692_v17, %v674_v16 }
 0x9bf   :  { %1426 = vtanh.f32 %v695_v18  ;;  %v1322_v25 = vmul.f32 -1.442695, %v695_v18 }
 0x9c2   :  { %v628_v20 = vpop.f32.mrf.mxu3 }
 0x9c5   :  { %v1427_v19 = vpop.eup %1426 }
 0x9c6   :  { %718 = vrot.lane.b32.xlu0 %v1427_v19, %s1560_s0 }
 0x9c8   :  { %v603_v21 = vpop.f32.mrf.mxu2 }
 0x9c9   :  { %v629_v22 = vadd.f32 %v628_v20, %v603_v21  ;;  %v1566_v20 = vmov 5  }
 0x9ca   :  { %1362 = vset.pattern.permute.xlu2 %v1566_v20  ;;  %v1853_v20 = vld [vmem:[#allocation4 + $0x1] ss:$0 sm:$0xff] }
 0x9cb   :  { %v631_v23 = vadd.f32 %v1686_v50, %v629_v22 }
 0x9cd   :  { %1428 = vtanh.f32 %v631_v23  ;;  %v1320_v28 = vmul.f32 -1.442695, %v631_v23 }
 0x9ce   :  { %1430 = vpow2.f32 %v1322_v25 }
 0x9d3   :  { %v1429_v24 = vpop.eup %1428 }
 0x9d4   :  { %654 = vrot.lane.b32.xlu1 %v1429_v24, %s1560_s0  ;;  %v1431_v26 = vpop.eup %1430 }
 0x9d5   :  { %v699_v27 = vadd.f32 1.0, %v1431_v26 }
 0x9d7   :  { %1432 = vrcp.f32 %v699_v27  ;;  %v711_v48 = vand.u32 2147483648, %v699_v27  ;;  %vm705_vm15 = vweird.f32 %v699_v27  ;;  %v709_v51 = vand.u32 2147483647, %v699_v27 }
 0x9d8   :  { %1434 = vpow2.f32 %v1320_v28 }
 0x9d9   :  { %v712_v32 = vor.u32 1.1754944e-38, %v711_v48  ;;  %vm710_vm1 = vcmp.eq.f32.partialorder %v709_v51, 8.507059e+37 }
 0x9dd   :  { %v1433_v29 = vpop.eup %1432 }
 0x9de   :  { %v1435_v30 = vpop.eup %1434  ;;  %v701_v33 = vmul.f32 %v1433_v29, %v699_v27  ;;  %vm706_vm14 = vweird.f32 %v1433_v29 }
 0x9df   :  { %v635_v31 = vadd.f32 1.0, %v1435_v30  ;;  %vm707_vm0 = vmor %vm705_vm15, %vm706_vm14 }
 0x9e0   :  { %v702_v40 = vsub.f32 1.0, %v701_v33 }
 0x9e1   :  { %1436 = vrcp.f32 %v635_v31  ;;  %v647_v60 = vand.u32 2147483648, %v635_v31  ;;  %vm641_vm3 = vweird.f32 %v635_v31  ;;  %v645_v46 = vand.u32 2147483647, %v635_v31 }
 0x9e2   :  { %v703_v43 = vmul.f32 %v1433_v29, %v702_v40 }
 0x9e3   :  { %v648_v63 = vor.u32 1.1754944e-38, %v647_v60  ;;  %vm646_vm6 = vcmp.eq.f32.partialorder %v645_v46, 8.507059e+37 }
 0x9e4   :  { %v704_v47 = vadd.f32 %v1433_v29, %v703_v43 }
 0x9e6   :  { %v708_v52 = vsel %vm707_vm0, %v1433_v29, %v704_v47 }
 0x9e7   :  { %v1437_v45 = vpop.eup %1436  ;;  %v713_v57 = vsel %vm710_vm1, %v712_v32, %v708_v52 }
 0x9e8   :  { %v637_v49 = vmul.f32 %v1437_v45, %v635_v31  ;;  %vm642_vm2 = vweird.f32 %v1437_v45  ;;  %v716_v9 = vmul.f32 %v713_v57, %v1768_v0 }
 0x9e9   :  { %vm643_vm5 = vmor %vm641_vm3, %vm642_vm2 }
 0x9ea   :  { %v638_v54 = vsub.f32 1.0, %v637_v49 }
 0x9ec   :  { %v639_v39 = vmul.f32 %v1437_v45, %v638_v54 }
 0x9ee   :  { %v640_v59 = vadd.f32 %v1437_v45, %v639_v39 }
 0x9f0   :  { %v644_v62 = vsel %vm643_vm5, %v1437_v45, %v640_v59 }
 0x9f1   :  { %v649_v8 = vsel %vm646_vm6, %v648_v63, %v644_v62 }
 0x9f2   :  { %v652_v13 = vmul.f32 %v649_v8, %v1763_v61 }
 0xa38   :  { %v719_v55 = vpop.permute.xlu0 %718 }
 0xa39   :  { %v721_v58 = vmul.f32 %v719_v55, %v713_v57 }
 0xa3b   :  { %723 = vrot.lane.b32.xlu2 %v721_v58, %s1561_s1 }
 0xa46   :  { %v655_v6 = vpop.permute.xlu1 %654 }
 0xa47   :  { %v657_v53 = vmul.f32 %v655_v6, %v649_v8 }
 0xa49   :  { %659 = vrot.lane.b32.xlu0 %v657_v53, %s1561_s1 }
 0xa95   :  { %v724_v11 = vpop.permute.xlu2 %723 }
 0xa96   :  { %v1798_v12 = vadd.f32 %v724_v11, %v716_v9 }
 0xa98   :  { %1438 = vtanh.f32 %v1798_v12 }
 0xa9e   :  { %v1439_v56 = vpop.eup %1438 }
 0xa9f   :  { %729 = vrot.lane.b32.xlu1 %v1439_v56, %s1560_s0 }
 0xabb   :  { %v660_v14 = vpop.permute.xlu0 %659 }
 0xabc   :  { %v1803_v15 = vadd.f32 %v660_v14, %v652_v13 }
 0xabe   :  { %1440 = vtanh.f32 %v1803_v15 }
 0xac4   :  { %v1441_v16 = vpop.eup %1440 }
 0xac5   :  { %665 = vrot.lane.b32.xlu2 %v1441_v16, %s1560_s0  ;;  %v1844_v16 = vld [vmem:[#allocation2] sm:$0xff] }
 0xacd   :  { %822 = vperm.xlu2 %1362, %v1598_v4  }
 0xb11   :  { %v730_v17 = vpop.permute.xlu1 %729 }
 0xb12   :  { %v732_v0 = vmul.f32 %v730_v17, %v713_v57 }
 0xb14   :  { %759 = vrot.lane.b32.xlu0 %v732_v0, %s1561_s1 }
 0xb1f   :  { %v666_v18 = vpop.permute.xlu2 %665 }
 0xb20   :  { %v668_v19 = vmul.f32 %v666_v18, %v649_v8  ;;  %v1850_v18 = vld [vmem:[#allocation4] ss:$0 sm:$0xff] }
 0xb22   :  { %734 = vrot.lane.b32.xlu1 %v668_v19, %s1561_s1 }
 0xb86   :  { %v760_v61 = vpop.permute.xlu0 %759 }
 0xb87   :  { %1324 = vmatmul.msk.f32.vlgmr.msrb.gmra.mxu2 %vm68_vm4, %v760_v61  ;;  %1326 = vmatmul.msk.f32.vlgmr.msrb.gmra.mxu3 %vm68_vm4, %v760_v61 }
 0xb88   :  { %1231 = vmatpush.msrb.mxu3 %v1623_v34  ;;  %1206 = vmatpush.msrb.mxu2 %v1628_v36  ;;  %v823_v34 = vpop.permute.xlu2 %822 }
 0xb8a   :  { %1232 = vmatpush.msrb.mxu3 %v1625_v35  ;;  %1207 = vmatpush.msrb.mxu2 %v1645_v41  ;;  %v825_v35 = vmul.f32 %v1611_v7, %v823_v34 }
 0xb8c   :  { %1233 = vmatpush.msrb.mxu3 %v1630_v37  ;;  %1208 = vmatpush.msrb.mxu2 %v1647_v42  ;;  %v826_v36 = vadd.f32 %v1614_v10, %v825_v35 }
 0xb8e   :  { %1234 = vmatpush.msrb.mxu3 %v1636_v38  ;;  %1209 = vmatpush.msrb.mxu2 %v1650_v44 }
 0xb94   :  { %v735_v4 = vpop.permute.xlu1 %734 }
 0xb95   :  { %1323 = vmatmul.msk.f32.vlgmr.msrb.gmra.mxu1 %vm68_vm4, %v735_v4 }
 0xb96   :  { %1143 = vmatpush.msrb.mxu1 %v1591_v1 }
 0xb98   :  { %1144 = vmatpush.msrb.mxu1 %v1593_v2 }
 0xb9a   :  { %1145 = vmatpush.msrb.mxu1 %v1596_v3 }
 0xb9c   :  { %1146 = vmatpush.msrb.mxu1 %v1604_v5 }
 0xc0a   :  { %v844_v37 = vpop.f32.mrf.mxu3  ;;  %v780_v41 = vpop.f32.mrf.mxu2 }
 0xc0b   :  { %v847_v38 = vadd.f32 %v844_v37, %v826_v36 }
 0xc0d   :  { %1442 = vtanh.f32 %v847_v38  ;;  %v1327_v3 = vmul.f32 -1.442695, %v847_v38 }
 0xc12   :  { %v755_v42 = vpop.f32.mrf.mxu1 }
 0xc13   :  { %v781_v44 = vadd.f32 %v780_v41, %v755_v42  ;;  %v1443_v21 = vpop.eup %1442 }
 0xc14   :  { %870 = vrot.lane.b32.xlu1 %v1443_v21, %s1560_s0 }
 0xc15   :  { %v783_v1 = vadd.f32 %v1686_v50, %v781_v44 }
 0xc17   :  { %1444 = vtanh.f32 %v783_v1  ;;  %v1325_v5 = vmul.f32 -1.442695, %v783_v1 }
 0xc18   :  { %1446 = vpow2.f32 %v1327_v3 }
 0xc19   :  { %1448 = vpow2.f32 %v1325_v5 }
 0xc1d   :  { %v1445_v2 = vpop.eup %1444 }
 0xc1e   :  { %806 = vrot.lane.b32.xlu0 %v1445_v2, %s1560_s0  ;;  %v1447_v7 = vpop.eup %1446 }
 0xc1f   :  { %v851_v10 = vadd.f32 1.0, %v1447_v7  ;;  %v1449_v22 = vpop.eup %1448 }
 0xc20   :  { %v787_v23 = vadd.f32 1.0, %v1449_v22 }
 0xc21   :  { %1450 = vrcp.f32 %v851_v10  ;;  %v863_v31 = vand.u32 2147483648, %v851_v10  ;;  %vm857_vm8 = vweird.f32 %v851_v10  ;;  %v861_v40 = vand.u32 2147483647, %v851_v10 }
 0xc22   :  { %1452 = vrcp.f32 %v787_v23  ;;  %v799_v32 = vand.u32 2147483648, %v787_v23  ;;  %vm793_vm12 = vweird.f32 %v787_v23  ;;  %v797_v54 = vand.u32 2147483647, %v787_v23 }
 0xc23   :  { %v864_v45 = vor.u32 1.1754944e-38, %v863_v31  ;;  %vm862_vm10 = vcmp.eq.f32.partialorder %v861_v40, 8.507059e+37 }
 0xc24   :  { %v800_v57 = vor.u32 1.1754944e-38, %v799_v32  ;;  %vm798_vm14 = vcmp.eq.f32.partialorder %v797_v54, 8.507059e+37 }
 0xc27   :  { %v1451_v24 = vpop.eup %1450 }
 0xc28   :  { %v853_v25 = vmul.f32 %v1451_v24, %v851_v10  ;;  %v1453_v27 = vpop.eup %1452  ;;  %vm858_vm7 = vweird.f32 %v1451_v24 }
 0xc29   :  { %v789_v29 = vmul.f32 %v1453_v27, %v787_v23  ;;  %vm859_vm9 = vmor %vm857_vm8, %vm858_vm7  ;;  %vm794_vm11 = vweird.f32 %v1453_v27 }
 0xc2a   :  { %v854_v26 = vsub.f32 1.0, %v853_v25  ;;  %vm795_vm13 = vmor %vm793_vm12, %vm794_vm11 }
 0xc2b   :  { %v790_v33 = vsub.f32 1.0, %v789_v29 }
 0xc2c   :  { %v855_v28 = vmul.f32 %v1451_v24, %v854_v26 }
 0xc2d   :  { %v791_v47 = vmul.f32 %v1453_v27, %v790_v33 }
 0xc2e   :  { %v856_v30 = vadd.f32 %v1451_v24, %v855_v28 }
 0xc2f   :  { %v792_v52 = vadd.f32 %v1453_v27, %v791_v47 }
 0xc30   :  { %v860_v43 = vsel %vm859_vm9, %v1451_v24, %v856_v30 }
 0xc31   :  { %v865_v48 = vsel %vm862_vm10, %v864_v45, %v860_v43  ;;  %v796_v55 = vsel %vm795_vm13, %v1453_v27, %v792_v52 }
 0xc32   :  { %v801_v39 = vsel %vm798_vm14, %v800_v57, %v796_v55  ;;  %v868_v6 = vmul.f32 %v865_v48, %v1798_v12 }
 0xc33   :  { %v804_v60 = vmul.f32 %v801_v39, %v1803_v15  ;;  %v1567_v15 = vmov 6  }
 0xc34   :  { %1363 = vset.pattern.permute.xlu2 %v1567_v15 }
 0xc86   :  { %v871_v49 = vpop.permute.xlu1 %870 }
 0xc87   :  { %v873_v51 = vmul.f32 %v871_v49, %v865_v48 }
 0xc89   :  { %875 = vrot.lane.b32.xlu0 %v873_v51, %s1561_s1 }
 0xc90   :  { %v807_v58 = vpop.permute.xlu0 %806 }
 0xc91   :  { %v809_v59 = vmul.f32 %v807_v58, %v801_v39 }
 0xc93   :  { %811 = vrot.lane.b32.xlu2 %v809_v59, %s1561_s1 }
 0xced   :  { %v812_v46 = vpop.permute.xlu2 %811 }
 0xcee   :  { %v1833_v62 = vadd.f32 %v812_v46, %v804_v60 }
 0xcf0   :  { %1454 = vtanh.f32 %v1833_v62 }
 0xcf6   :  { %v1455_v63 = vpop.eup %1454 }
 0xcf7   :  { %817 = vrot.lane.b32.xlu1 %v1455_v63, %s1560_s0 }
 0xcfb   :  { %v876_v8 = vpop.permute.xlu0 %875 }
 0xcfc   :  { %v1838_v53 = vadd.f32 %v876_v8, %v868_v6 }
 0xcfe   :  { %1456 = vtanh.f32 %v1838_v53 }
 0xd04   :  { %v1457_v9 = vpop.eup %1456 }
 0xd05   :  { %881 = vrot.lane.b32.xlu2 %v1457_v9, %s1560_s0 }
 0xd0d   :  { %974 = vperm.xlu2 %1363, %v1844_v16  }
 0xd5f   :  { %v882_v11 = vpop.permute.xlu2 %881 }
 0xd60   :  { %v884_v56 = vmul.f32 %v882_v11, %v865_v48  ;;  %v1568_v11 = vmov 7  }
 0xd61   :  { %1364 = vset.pattern.permute.xlu2 %v1568_v11  ;;  %1365 = vset.pattern.permute.xlu0 %v1568_v11 }
 0xd62   :  { %911 = vrot.lane.b32.xlu1 %v884_v56, %s1561_s1 }
 0xd67   :  { %v975_v0 = vpop.permute.xlu2 %974 }
 0xd68   :  { %v977_v19 = vmul.f32 %v1850_v18, %v975_v0 }
 0xd69   :  { %v818_v13 = vpop.permute.xlu1 %817 }
 0xd6a   :  { %v820_v14 = vmul.f32 %v818_v13, %v801_v39  ;;  %v978_v61 = vadd.f32 %v1853_v20, %v977_v19 }
 0xd6c   :  { %886 = vrot.lane.b32.xlu0 %v820_v14, %s1561_s1 }
 0xdd4   :  { %v912_v12 = vpop.permute.xlu1 %911 }
 0xdd5   :  { %1329 = vmatmul.msk.f32.vlgmr.msra.gmra.mxu1 %vm68_vm4, %v912_v12  ;;  %1331 = vmatmul.msk.f32.vlgmr.msra.gmra.mxu2 %vm68_vm4, %v912_v12 }
 0xdde   :  { %v887_v17 = vpop.permute.xlu0 %886 }
 0xddf   :  { %1328 = vmatmul.msk.f32.vlgmr.msra.gmra.mxu0 %vm68_vm4, %v887_v17 }
 0xe52   :  { %v932_v35 = vpop.f32.mrf.mxu1 }
 0xe58   :  { %v996_v4 = vpop.f32.mrf.mxu2 }
 0xe59   :  { %v999_v34 = vadd.f32 %v996_v4, %v978_v61  ;;  %v1880_v4 = vld [vmem:[#allocation4 + $0x2] ss:$0 sm:$0xff] }
 0xe5b   :  { %1458 = vtanh.f32 %v999_v34  ;;  %v1332_v44 = vmul.f32 -1.442695, %v999_v34 }
 0xe5c   :  { %v907_v36 = vpop.f32.mrf.mxu0 }
 0xe5d   :  { %v933_v37 = vadd.f32 %v932_v35, %v907_v36 }
 0xe5f   :  { %v935_v38 = vadd.f32 %v1686_v50, %v933_v37 }
 0xe61   :  { %1460 = vtanh.f32 %v935_v38  ;;  %v1459_v41 = vpop.eup %1458  ;;  %v1330_v21 = vmul.f32 -1.442695, %v935_v38 }
 0xe62   :  { %1022 = vrot.lane.b32.xlu1 %v1459_v41, %s1560_s0  ;;  %1462 = vpow2.f32 %v1332_v44 }
 0xe63   :  { %1464 = vpow2.f32 %v1330_v21 }
 0xe67   :  { %v1461_v42 = vpop.eup %1460 }
 0xe68   :  { %958 = vrot.lane.b32.xlu0 %v1461_v42, %s1560_s0  ;;  %v1463_v1 = vpop.eup %1462 }
 0xe69   :  { %v1003_v2 = vadd.f32 1.0, %v1463_v1  ;;  %v1465_v3 = vpop.eup %1464 }
 0xe6a   :  { %v939_v5 = vadd.f32 1.0, %v1465_v3 }
 0xe6b   :  { %1466 = vrcp.f32 %v1003_v2  ;;  %v1015_v27 = vand.u32 2147483648, %v1003_v2  ;;  %vm1009_vm0 = vweird.f32 %v1003_v2  ;;  %v1013_v29 = vand.u32 2147483647, %v1003_v2 }
 0xe6c   :  { %1468 = vrcp.f32 %v939_v5  ;;  %v951_v40 = vand.u32 2147483648, %v939_v5  ;;  %vm945_vm5 = vweird.f32 %v939_v5  ;;  %v949_v47 = vand.u32 2147483647, %v939_v5 }
 0xe6d   :  { %v1016_v31 = vor.u32 1.1754944e-38, %v1015_v27  ;;  %vm1014_vm3 = vcmp.eq.f32.partialorder %v1013_v29, 8.507059e+37 }
 0xe6e   :  { %v952_v51 = vor.u32 1.1754944e-38, %v951_v40  ;;  %vm950_vm7 = vcmp.eq.f32.partialorder %v949_v47, 8.507059e+37 }
 0xe71   :  { %v1467_v7 = vpop.eup %1466 }
 0xe72   :  { %v1005_v10 = vmul.f32 %v1467_v7, %v1003_v2  ;;  %v1469_v50 = vpop.eup %1468  ;;  %vm1010_vm15 = vweird.f32 %v1467_v7 }
 0xe73   :  { %v941_v23 = vmul.f32 %v1469_v50, %v939_v5  ;;  %vm1011_vm1 = vmor %vm1009_vm0, %vm1010_vm15  ;;  %vm946_vm2 = vweird.f32 %v1469_v50 }
 0xe74   :  { %v1006_v22 = vsub.f32 1.0, %v1005_v10  ;;  %vm947_vm6 = vmor %vm945_vm5, %vm946_vm2  ;;  %vm1295_vm5 = vcmask 1024  }
 0xe75   :  { %v942_v25 = vsub.f32 1.0, %v941_v23 }
 0xe76   :  { %v1007_v24 = vmul.f32 %v1467_v7, %v1006_v22 }
 0xe77   :  { %v943_v28 = vmul.f32 %v1469_v50, %v942_v25 }
 0xe78   :  { %v1008_v26 = vadd.f32 %v1467_v7, %v1007_v24 }
 0xe79   :  { %v944_v33 = vadd.f32 %v1469_v50, %v943_v28 }
 0xe7a   :  { %v1012_v30 = vsel %vm1011_vm1, %v1467_v7, %v1008_v26 }
 0xe7b   :  { %v1017_v45 = vsel %vm1014_vm3, %v1016_v31, %v1012_v30  ;;  %v948_v49 = vsel %vm947_vm6, %v1469_v50, %v944_v33 }
 0xe7c   :  { %v953_v32 = vsel %vm950_vm7, %v952_v51, %v948_v49  ;;  %v1020_v59 = vmul.f32 %v1017_v45, %v1838_v53 }
 0xe7d   :  { %v956_v55 = vmul.f32 %v953_v32, %v1833_v62 }
 0xed4   :  { %v1023_v43 = vpop.permute.xlu1 %1022 }
 0xed5   :  { %v1025_v48 = vmul.f32 %v1023_v43, %v1017_v45 }
 0xed7   :  { %1027 = vrot.lane.b32.xlu0 %v1025_v48, %s1561_s1 }
 0xeda   :  { %v959_v52 = vpop.permute.xlu0 %958 }
 0xedb   :  { %v961_v54 = vmul.f32 %v959_v52, %v953_v32 }
 0xedd   :  { %963 = vrot.lane.b32.xlu2 %v961_v54, %s1561_s1 }
 0xf37   :  { %v964_v57 = vpop.permute.xlu2 %963 }
 0xf38   :  { %v1862_v58 = vadd.f32 %v964_v57, %v956_v55 }
 0xf3a   :  { %1470 = vtanh.f32 %v1862_v58 }
 0xf40   :  { %v1471_v39 = vpop.eup %1470 }
 0xf41   :  { %969 = vrot.lane.b32.xlu1 %v1471_v39, %s1560_s0 }
 0xf49   :  { %v1028_v60 = vpop.permute.xlu0 %1027 }
 0xf4a   :  { %v1867_v46 = vadd.f32 %v1028_v60, %v1020_v59 }
 0xf4c   :  { %1472 = vtanh.f32 %v1867_v46 }
 0xf52   :  { %v1473_v63 = vpop.eup %1472 }
 0xf53   :  { %1033 = vrot.lane.b32.xlu2 %v1473_v63, %s1560_s0 }
 0xf5b   :  { %1126 = vperm.xlu2 %1364, %v1844_v16  }
 0xfad   :  { %v1034_v6 = vpop.permute.xlu2 %1033 }
 0xfae   :  { %v1036_v62 = vmul.f32 %v1034_v6, %v1017_v45 }
 0xfb0   :  { %1063 = vrot.lane.b32.xlu1 %v1036_v62, %s1561_s1 }
 0xfb3   :  { %v970_v8 = vpop.permute.xlu1 %969 }
 0xfb4   :  { %v972_v9 = vmul.f32 %v970_v8, %v953_v32 }
 0xfb5   :  { %v1127_v13 = vpop.permute.xlu2 %1126 }
 0xfb6   :  { %1038 = vrot.lane.b32.xlu0 %v972_v9, %s1561_s1  ;;  %v1129_v14 = vmul.f32 %v1850_v18, %v1127_v13 }
 0xfb8   :  { %v1130_v15 = vadd.f32 %v1853_v20, %v1129_v14 }
0x1022   :  { %v1064_v53 = vpop.permute.xlu1 %1063 }
0x1023   :  { %1334 = vmatmul.msk.f32.vlgmr.msrb.gmra.mxu0 %vm68_vm4, %v1064_v53  ;;  %1336 = vmatmul.msk.f32.vlgmr.msrb.gmra.mxu1 %vm68_vm4, %v1064_v53 }
0x1028   :  { %v1039_v56 = vpop.permute.xlu0 %1038 }
0x1029   :  { %1333 = vmatmul.msk.f32.vlgmr.msra.gmra.mxu3 %vm68_vm4, %v1039_v56 }
0x10a0   :  { %v1148_v12 = vpop.f32.mrf.mxu1  ;;  %v1084_v16 = vpop.f32.mrf.mxu0 }
0x10a1   :  { %v1151_v17 = vadd.f32 %v1148_v12, %v1130_v15 }
0x10a3   :  { %1474 = vtanh.f32 %v1151_v17  ;;  %v1337_v18 = vmul.f32 -1.442695, %v1151_v17 }
0x10a9   :  { %v1475_v0 = vpop.eup %1474 }
0x10aa   :  { %1174 = vrot.lane.b32.xlu1 %v1475_v0, %s1560_s0 }
0x10ac   :  { %v1059_v19 = vpop.f32.mrf.mxu3 }
0x10ad   :  { %v1085_v61 = vadd.f32 %v1084_v16, %v1059_v19 }
0x10af   :  { %v1087_v34 = vadd.f32 %v1880_v4, %v1085_v61 }
0x10b1   :  { %1476 = vtanh.f32 %v1087_v34  ;;  %v1335_v37 = vmul.f32 -1.442695, %v1087_v34 }
0x10b2   :  { %1478 = vpow2.f32 %v1337_v18  ;;  %v1369_v18 = vld [vmem:[#allocation4 + $0x3] ss:$0 sm:$0xff] }
0x10b7   :  { %v1477_v35 = vpop.eup %1476 }
0x10b8   :  { %1110 = vrot.lane.b32.xlu0 %v1477_v35, %s1560_s0  ;;  %v1479_v20 = vpop.eup %1478 }
0x10b9   :  { %v1155_v36 = vadd.f32 1.0, %v1479_v20 }
0x10bb   :  { %1480 = vrcp.f32 %v1155_v36  ;;  %v1167_v5 = vand.u32 2147483648, %v1155_v36  ;;  %vm1161_vm9 = vweird.f32 %v1155_v36  ;;  %v1165_v10 = vand.u32 2147483647, %v1155_v36 }
0x10bc   :  { %1482 = vpow2.f32 %v1335_v37 }
0x10bd   :  { %v1168_v22 = vor.u32 1.1754944e-38, %v1167_v5  ;;  %vm1166_vm11 = vcmp.eq.f32.partialorder %v1165_v10, 8.507059e+37 }
0x10c1   :  { %v1481_v38 = vpop.eup %1480 }
0x10c2   :  { %v1483_v41 = vpop.eup %1482  ;;  %v1157_v44 = vmul.f32 %v1481_v38, %v1155_v36  ;;  %vm1162_vm8 = vweird.f32 %v1481_v38 }
0x10c3   :  { %v1091_v42 = vadd.f32 1.0, %v1483_v41  ;;  %vm1163_vm10 = vmor %vm1161_vm9, %vm1162_vm8 }
0x10c4   :  { %v1158_v21 = vsub.f32 1.0, %v1157_v44 }
0x10c5   :  { %1484 = vrcp.f32 %v1091_v42  ;;  %v1103_v29 = vand.u32 2147483648, %v1091_v42  ;;  %vm1097_vm13 = vweird.f32 %v1091_v42  ;;  %v1101_v30 = vand.u32 2147483647, %v1091_v42 }
0x10c6   :  { %v1159_v1 = vmul.f32 %v1481_v38, %v1158_v21 }
0x10c7   :  { %v1104_v33 = vor.u32 1.1754944e-38, %v1103_v29  ;;  %vm1102_vm15 = vcmp.eq.f32.partialorder %v1101_v30, 8.507059e+37 }
0x10c8   :  { %v1160_v3 = vadd.f32 %v1481_v38, %v1159_v1 }
0x10ca   :  { %v1164_v50 = vsel %vm1163_vm10, %v1481_v38, %v1160_v3 }
0x10cb   :  { %v1485_v2 = vpop.eup %1484  ;;  %v1169_v25 = vsel %vm1166_vm11, %v1168_v22, %v1164_v50 }
0x10cc   :  { %v1093_v7 = vmul.f32 %v1485_v2, %v1091_v42  ;;  %vm1098_vm12 = vweird.f32 %v1485_v2  ;;  %v1172_v52 = vmul.f32 %v1169_v25, %v1867_v46 }
0x10cd   :  { %vm1099_vm14 = vmor %vm1097_vm13, %vm1098_vm12 }
0x10ce   :  { %v1094_v23 = vsub.f32 1.0, %v1093_v7 }
0x10d0   :  { %v1095_v27 = vmul.f32 %v1485_v2, %v1094_v23 }
0x10d2   :  { %v1096_v28 = vadd.f32 %v1485_v2, %v1095_v27 }
0x10d4   :  { %v1100_v31 = vsel %vm1099_vm14, %v1485_v2, %v1096_v28 }
0x10d5   :  { %v1105_v43 = vsel %vm1102_vm15, %v1104_v33, %v1100_v31 }
0x10d6   :  { %v1108_v47 = vmul.f32 %v1105_v43, %v1862_v58 }
0x111c   :  { %v1175_v24 = vpop.permute.xlu1 %1174 }
0x111d   :  { %v1177_v26 = vmul.f32 %v1175_v24, %v1169_v25 }
0x111f   :  { %1179 = vrot.lane.b32.xlu0 %v1177_v26, %s1561_s1 }
0x112a   :  { %v1111_v40 = vpop.permute.xlu0 %1110 }
0x112b   :  { %v1113_v45 = vmul.f32 %v1111_v40, %v1105_v43 }
0x112d   :  { %1115 = vrot.lane.b32.xlu2 %v1113_v45, %s1561_s1 }
0x1187   :  { %v1116_v48 = vpop.permute.xlu2 %1115 }
0x1188   :  { %v1118_v49 = vadd.f32 %v1116_v48, %v1108_v47 }
0x118a   :  { %1486 = vtanh.f32 %v1118_v49 }
0x1190   :  { %v1487_v51 = vpop.eup %1486 }
0x1191   :  { %1121 = vrot.lane.b32.xlu1 %v1487_v51, %s1560_s0  ;;  %v1180_v32 = vpop.permute.xlu0 %1179 }
0x1192   :  { %v1182_v54 = vadd.f32 %v1180_v32, %v1172_v52 }
0x1194   :  { %1488 = vtanh.f32 %v1182_v54 }
0x119a   :  { %v1489_v55 = vpop.eup %1488 }
0x119b   :  { %1185 = vrot.lane.b32.xlu2 %v1489_v55, %s1560_s0 }
0x11f5   :  { %v1186_v57 = vpop.permute.xlu2 %1185 }
0x11f6   :  { %v1188_v39 = vmul.f32 %v1186_v57, %v1169_v25 }
0x11f8   :  { %1215 = vrot.lane.b32.xlu1 %v1188_v39, %s1561_s1 }
0x1203   :  { %v1122_v59 = vpop.permute.xlu1 %1121 }
0x1204   :  { %v1124_v58 = vmul.f32 %v1122_v59, %v1105_v43 }
0x1206   :  { %1190 = vrot.lane.b32.xlu0 %v1124_v58, %s1561_s1 }
0x126a   :  { %v1216_v60 = vpop.permute.xlu1 %1215 }
0x126b   :  { %1339 = vmatmul.msk.f32.vlgmr.msrb.gmra.mxu3 %vm68_vm4, %v1216_v60 }
0x1278   :  { %v1191_v46 = vpop.permute.xlu0 %1190 }
0x1279   :  { %1338 = vmatmul.msk.f32.vlgmr.msrb.gmra.mxu2 %vm68_vm4, %v1191_v46 }
0x12ee   :  { %v1236_v63 = vpop.f32.mrf.mxu3 }
0x12fc   :  { %v1211_v6 = vpop.f32.mrf.mxu2 }
0x12fd   :  { %v1237_v62 = vadd.f32 %v1236_v63, %v1211_v6 }
0x12ff   :  { %v1239_v8 = vadd.f32 %v1880_v4, %v1237_v62 }
0x1301   :  { %1490 = vtanh.f32 %v1239_v8  ;;  %v1340_v11 = vmul.f32 -1.442695, %v1239_v8 }
0x1303   :  { %1492 = vpow2.f32 %v1340_v11 }
0x1307   :  { %v1491_v9 = vpop.eup %1490 }
0x1308   :  { %1262 = vrot.lane.b32.xlu2 %v1491_v9, %s1560_s0 }
0x1309   :  { %v1493_v53 = vpop.eup %1492 }
0x130a   :  { %v1243_v56 = vadd.f32 1.0, %v1493_v53 }
0x130c   :  { %1494 = vrcp.f32 %v1243_v56  ;;  %v1255_v0 = vand.u32 2147483648, %v1243_v56  ;;  %vm1249_vm1 = vweird.f32 %v1243_v56  ;;  %v1253_v16 = vand.u32 2147483647, %v1243_v56 }
0x130e   :  { %v1256_v61 = vor.u32 1.1754944e-38, %v1255_v0  ;;  %vm1254_vm3 = vcmp.eq.f32.partialorder %v1253_v16, 8.507059e+37 }
0x1310   :  { %1279 = vrot.lane.b32.xlu2 %v1369_v18, %s1569_s21 }
0x1312   :  { %v1495_v13 = vpop.eup %1494 }
0x1313   :  { %v1245_v14 = vmul.f32 %v1495_v13, %v1243_v56  ;;  %vm1250_vm0 = vweird.f32 %v1495_v13 }
0x1314   :  { %vm1251_vm2 = vmor %vm1249_vm1, %vm1250_vm0 }
0x1315   :  { %v1246_v15 = vsub.f32 1.0, %v1245_v14 }
0x1317   :  { %v1247_v12 = vmul.f32 %v1495_v13, %v1246_v15 }
0x1319   :  { %v1248_v17 = vadd.f32 %v1495_v13, %v1247_v12 }
0x131b   :  { %v1252_v19 = vsel %vm1251_vm2, %v1495_v13, %v1248_v17 }
0x131c   :  { %v1257_v34 = vsel %vm1254_vm3, %v1256_v61, %v1252_v19 }
0x131d   :  { %v1260_v20 = vmul.f32 %v1257_v34, %v1118_v49 }
0x1362   :  { %v1263_v4 = vpop.permute.xlu2 %1262 }
0x1363   :  { %v1265_v35 = vmul.f32 %v1263_v4, %v1257_v34 }
0x1365   :  { %1267 = vrot.lane.b32.xlu0 %v1265_v35, %s1561_s1 }
0x136a   :  { %v1280_v42 = vpop.permute.xlu2 %1279 }
0x13d7   :  { %v1268_v36 = vpop.permute.xlu0 %1267 }
0x13d8   :  { %v1270_v37 = vadd.f32 %v1268_v36, %v1260_v20 }
0x13da   :  { %1496 = vtanh.f32 %v1270_v37 }
0x13e0   :  { %v1497_v38 = vpop.eup %1496 }
0x13e1   :  { %1273 = vrot.lane.b32.xlu1 %v1497_v38, %s1560_s0 }
0x1453   :  { %v1274_v41 = vpop.permute.xlu1 %1273 }
0x1454   :  { %v1276_v44 = vmul.f32 %v1274_v41, %v1257_v34 }
0x1456   :  { %v1282_v21 = vmul.f32 %v1280_v42, %v1276_v44 }
0x1458   :  { %1284 = vrot.lane.b32.xlu0 %v1282_v21, %s1561_s1 }
0x14ca   :  { %v1285_v1 = vpop.permute.xlu0 %1284 }
0x14cb   :  { %v1287_v2 = vsel %vm68_vm4, %v1285_v1, 0.0 }
0x14cc   :  { %1288 = vadd.xlane.f32.xlu1 %v1287_v2 }
0x153f   :  { %v1289_v3 = vpop.xlane.xlu1 %1288 }
0x1540   :  { %v1290_v5 = vadd.f32 %v1369_v18, %v1289_v3 }
0x1542   :  { %1292 = vrot.lane.b32.xlu2 %v1290_v5, %s1569_s21 }
0x159c   :  { %v1293_v7 = vpop.permute.xlu2 %1292 }
0x159d   :  { %1296 = vst.msk [vmem:[%s1905_s2] sm:$0x3] %vm1295_vm5, %v1293_v7 }
0x159e   :  { %1301 = vsyncpa [#allocation3], 1 }
0x159f   :  { %1302 = vsyncpa [#allocation5], 1 }

</bundles_post_ra>
